<compile_context>
chip_gen: v7x
topology: tpu7x:2x2x1
jax: 0.10.0
libtpu: 0.0.40
codegen_flags: <defaults>
</compile_context>

<pallas_src>
import functools
import math

import jax
import jax.numpy as jnp
from jax import lax
from jax.experimental import pallas as pl
from jax.experimental.pallas import tpu as pltpu


# --------------------------- chip-aware config -------------------------------

def _tpu_vmem_capacity():
    try:
        return int(pltpu.get_tpu_info().vmem_capacity_bytes)
    except Exception:
        return 64 * 1024 * 1024            # conservative: v7x per-core VMEM


_VMEM_CAP = _tpu_vmem_capacity()
# Explicit scoped-VMEM limit: defaults (16 MiB v5e / 32 MiB v6e,v7x) are too
# small for whole-weight-resident FFN tiles at real ViT sizes.
_VMEM_LIMIT = max(32 << 20, min(_VMEM_CAP - (16 << 20), 100 << 20))
# Row-tile target: 512 on 128-MiB-VMEM chips (v5e/v6e), 256 on v7x (64 MiB).
_TM_TARGET = 512 if _VMEM_CAP >= (96 << 20) else 256

# Exact erf GELU matches torch nn.GELU(); flip to False on v5e to route the
# nonlinearity through the EUP (tanh approx) and free VALU slots.
_EXACT_GELU = True


def _copy_probe_kernel(x_ref, o_ref):
    o_ref[...] = x_ref[...]


def _probe_buffered_support():
    """Buffered(1) on constant-index weight blocks halves their VMEM footprint
    (matters on v7x's 64 MiB / v5e's small scoped default).  Probe once so we
    fall back cleanly if this jax build rejects pipeline_mode here."""
    try:
        spec = pl.BlockSpec((8, 128), lambda i: (0, 0),
                            pipeline_mode=pl.Buffered(1))
        fn = pl.pallas_call(
            _copy_probe_kernel,
            out_shape=jax.ShapeDtypeStruct((8, 128), jnp.float32),
            grid=(1,),
            in_specs=[spec],
            out_specs=pl.BlockSpec((8, 128), lambda i: (0, 0)))
        jax.block_until_ready(fn(jnp.zeros((8, 128), jnp.float32)))
        return True
    except Exception:
        return False


_USE_BUFFERED1 = _probe_buffered_support()


# ------------------------------ helpers ------------------------------------

def _round_up(x, m):
    return ((x + m - 1) // m) * m


def _const_spec(shape):
    """Whole-array block, constant index_map -> VMEM-resident across the grid."""
    idx = lambda *_: (0,) * len(shape)
    if _USE_BUFFERED1:
        return pl.BlockSpec(shape, idx, pipeline_mode=pl.Buffered(1))
    return pl.BlockSpec(shape, idx)


def _choose_tile(m, target):
    """Row-tile size.  Prefer a tile that divides M exactly so we never
    materialize a padded copy of the activation slab in HBM."""
    if m <= target:
        tm = _round_up(m, 8)
    else:
        tm = None
        for cand in range(target, 15, -16):      # multiples of 16 (bf16 tiles)
            if m % cand == 0:
                tm = cand
                break
        if tm is None:
            # TODO(synk): masked tail tile instead of padding for pathological M.
            tm = target
    return tm, _round_up(m, tm)


def _row_tiled(kernel, row_args, full_args, out_cols,
               out_dtype=jnp.float32, tm_target=None):
    """Run `kernel` over row tiles of the M axis of `row_args`.

    row_args: (M, K_i) arrays tiled along rows.
    full_args: weights / biases / LN params, whole-block, VMEM-resident.
    """
    m = row_args[0].shape[0]
    tm, m_pad = _choose_tile(m, tm_target or _TM_TARGET)
    if m_pad != m:
        row_args = [jnp.pad(a, ((0, m_pad - m), (0, 0))) for a in row_args]
    row_specs = [pl.BlockSpec((tm, a.shape[1]), lambda i: (i, 0))
                 for a in row_args]
    full_specs = [_const_spec(a.shape) for a in full_args]
    out = pl.pallas_call(
        kernel,
        out_shape=jax.ShapeDtypeStruct((m_pad, out_cols), out_dtype),
        grid=(m_pad // tm,),
        in_specs=row_specs + full_specs,
        out_specs=pl.BlockSpec((tm, out_cols), lambda i: (i, 0)),
        compiler_params=pltpu.CompilerParams(
            dimension_semantics=("parallel",),
            vmem_limit_bytes=_VMEM_LIMIT),
    )(*row_args, *full_args)
    return out[:m] if m_pad != m else out


# ----------------------------- Pallas kernels -------------------------------

def _matmul_bias_kernel(x_ref, w_ref, b_ref, o_ref):
    x = x_ref[...].astype(jnp.bfloat16)
    y = jnp.dot(x, w_ref[...], preferred_element_type=jnp.float32) + b_ref[...]
    o_ref[...] = y.astype(o_ref.dtype)


def _ln_matmul_kernel(x_ref, g_ref, bln_ref, w_ref, b_ref, o_ref, *, eps):
    # y = LN(x) @ W + b   (LN stats f32, matmul operands bf16, f32 accumulate)
    x = x_ref[...]
    mean = jnp.mean(x, axis=-1, keepdims=True)
    xc = x - mean
    var = jnp.mean(xc * xc, axis=-1, keepdims=True)
    ln = xc * lax.rsqrt(var + eps) * g_ref[...] + bln_ref[...]
    y = jnp.dot(ln.astype(jnp.bfloat16), w_ref[...],
                preferred_element_type=jnp.float32) + b_ref[...]
    o_ref[...] = y.astype(o_ref.dtype)           # bf16 for the QKV slab


def _ln_ffn_residual_kernel(x_ref, g_ref, bln_ref, w1_ref, b1_ref,
                            w2_ref, b2_ref, o_ref, *, eps):
    # y = x + FC2(GELU(FC1(LN(x))))
    # TODO(synk): for ViT-L-class hidden dims on v7x (64 MiB VMEM), tile the
    #             FFN over H with an inner grid axis + pl.when-gated accumulator.
    x = x_ref[...]
    mean = jnp.mean(x, axis=-1, keepdims=True)
    xc = x - mean
    var = jnp.mean(xc * xc, axis=-1, keepdims=True)
    ln = xc * lax.rsqrt(var + eps) * g_ref[...] + bln_ref[...]
    h = jnp.dot(ln.astype(jnp.bfloat16), w1_ref[...],
                preferred_element_type=jnp.float32) + b1_ref[...]
    if _EXACT_GELU:   # exact GELU (torch nn.GELU default), f32 on the VPU
        h = 0.5 * h * (1.0 + lax.erf(h * (1.0 / math.sqrt(2.0))))
    else:             # tanh approx -> EUP (v5e VALU relief)
        h = jax.nn.gelu(h, approximate=True)
    y = jnp.dot(h.astype(jnp.bfloat16), w2_ref[...],
                preferred_element_type=jnp.float32) + b2_ref[...]
    o_ref[...] = x + y


def _attn_outproj_kernel(qkv_ref, res_ref, wo_ref, bo_ref, o_ref, *,
                         num_heads, head_dim, seq_len):
    # One grid step per batch element.  Heads are processed with static slices
    # of the fused bf16 (S_pad, 3E) QKV slab; no concatenate: each head's
    # context is contracted against its (head_dim, E) slab of out_proj_w and
    # accumulated in f32, then residual + bias are added (fused out_proj).
    # 1/sqrt(head_dim) is folded into the Q projection weights at init.
    qkv = qkv_ref[0]                              # (S_pad, 3E) bf16
    s_pad = qkv.shape[0]
    emb = num_heads * head_dim
    # static mask for padded key rows (padded *query* rows produce garbage but
    # are never read downstream -- only row 0, the CLS token, is consumed).
    key_ids = lax.broadcasted_iota(jnp.int32, (1, s_pad), 1)
    neg = jnp.where(key_ids < seq_len, 0.0, -1e30).astype(jnp.float32)
    acc = jnp.zeros((s_pad, emb), jnp.float32)
    for h in range(num_heads):
        lo = h * head_dim
        q = qkv[:, lo:lo + head_dim]              # scale pre-folded into weights
        k = qkv[:, emb + lo:emb + lo + head_dim]
        v = qkv[:, 2 * emb + lo:2 * emb + lo + head_dim]
        s = lax.dot_general(q, k, (((1,), (1,)), ((), ())),
                            preferred_element_type=jnp.float32)
        s = s + neg
        s = s - jnp.max(s, axis=-1, keepdims=True)
        p = jnp.exp(s)
        p = p * pl.reciprocal(jnp.sum(p, axis=-1, keepdims=True), approx=True)
        ctx = jnp.dot(p.astype(jnp.bfloat16), v,
                      preferred_element_type=jnp.float32)       # (S_pad, dh)
        acc = acc + jnp.dot(ctx.astype(jnp.bfloat16),
                            wo_ref[lo:lo + head_dim, :],
                            preferred_element_type=jnp.float32)  # (S_pad, E)
    o_ref[0] = res_ref[0] + acc + bo_ref[...]     # lane-dense f32 store


# ------------------------------ wrappers ------------------------------------

def matmul_bias(x, w, b):
    return _row_tiled(_matmul_bias_kernel, [x], [w, b], w.shape[1])


def ln_matmul(x, g, bln, w, b, eps=1e-5, out_dtype=jnp.float32):
    return _row_tiled(functools.partial(_ln_matmul_kernel, eps=eps),
                      [x], [g, bln, w, b], w.shape[1], out_dtype=out_dtype)


def ln_ffn_residual(x, g, bln, w1, b1, w2, b2, eps=1e-5):
    return _row_tiled(functools.partial(_ln_ffn_residual_kernel, eps=eps),
                      [x], [g, bln, w1, b1, w2, b2], w2.shape[1])


def pallas_attention(qkv, resid, wo, bo, num_heads, seq_len):
    # qkv: (B, S_pad, 3E) bf16; resid: (B, S_pad, E) f32 residual stream.
    B, s_pad, three_e = qkv.shape
    E = three_e // 3
    dh = E // num_heads
    return pl.pallas_call(
        functools.partial(_attn_outproj_kernel, num_heads=num_heads,
                          head_dim=dh, seq_len=seq_len),
        out_shape=jax.ShapeDtypeStruct((B, s_pad, E), jnp.float32),
        grid=(B,),
        in_specs=[pl.BlockSpec((1, s_pad, three_e), lambda b: (b, 0, 0)),
                  pl.BlockSpec((1, s_pad, E), lambda b: (b, 0, 0)),
                  _const_spec(wo.shape),
                  _const_spec(bo.shape)],
        out_specs=pl.BlockSpec((1, s_pad, E), lambda b: (b, 0, 0)),
        compiler_params=pltpu.CompilerParams(
            dimension_semantics=("parallel",),
            vmem_limit_bytes=_VMEM_LIMIT),
    )(qkv, resid, wo, bo)


# ------------------------------- model glue ---------------------------------

def img_to_patch(x, patch_size):
    B, C, H, W = x.shape
    x = x.reshape(B, C, H // patch_size, patch_size, W // patch_size, patch_size)
    x = jnp.transpose(x, (0, 2, 4, 1, 3, 5))
    return x.reshape(B, (H // patch_size) * (W // patch_size),
                     C * patch_size * patch_size)


def vit_forward(x, params, patch_size, num_heads, num_classes):
    B = x.shape[0]
    patches = img_to_patch(x, patch_size)                  # (B, T, C*p*p)
    _, T, pd = patches.shape
    E = params["input_b"].shape[1]

    h = matmul_bias(patches.reshape(B * T, pd),
                    params["input_w"], params["input_b"]).reshape(B, T, E)

    cls = jnp.broadcast_to(params["cls_token"], (B, 1, E))
    h = jnp.concatenate([cls, h], axis=1)                  # (B, S, E)
    S = T + 1
    h = h + params["pos_embedding"][:, :S]
    # TODO(synk): dropout omitted (p=0.0 / inference => identity)

    # pad sequence to a multiple of 16 (bf16 packs two rows per sublane);
    # padded keys are masked in-kernel, padded rows never feed the output.
    s_pad = _round_up(S, 16)
    if s_pad != S:
        h = jnp.pad(h, ((0, 0), (0, s_pad - S), (0, 0)))

    for lp in params["layers"]:
        hf = h.reshape(B * s_pad, E)
        # fused LN1 + QKV projection -> bf16 slab (scale folded into Q weights)
        qkv = ln_matmul(hf, lp["ln1_g"], lp["ln1_b"],
                        lp["in_proj_w"], lp["in_proj_b"],
                        out_dtype=jnp.bfloat16)            # (M, 3E) bf16
        # fused attention + out_proj + residual add  -> (B, S_pad, E) f32
        h = pallas_attention(qkv.reshape(B, s_pad, 3 * E), h,
                             lp["out_proj_w"], lp["out_proj_b"],
                             num_heads, S)
        # fused LN2 + FFN (GELU) + residual add
        hf = ln_ffn_residual(h.reshape(B * s_pad, E),
                             lp["ln2_g"], lp["ln2_b"],
                             lp["fc1_w"], lp["fc1_b"],
                             lp["fc2_w"], lp["fc2_b"])
        h = hf.reshape(B, s_pad, E)

    cls_out = h[:, 0, :]                                   # (B, E)
    # fused final LN + classifier head (class dim padded to 128 lanes)
    logits = ln_matmul(cls_out, params["head_ln_g"], params["head_ln_b"],
                       params["head_w"], params["head_b"])
    return logits[:, :num_classes]                         # (B, num_classes)


# ----------------------------- parameter init -------------------------------

def init_params(key, *, embed_dim, hidden_dim, num_channels, num_heads,
                num_layers, num_classes, patch_size, num_patches):
    """Weights pre-transposed (K, N) in bf16; biases/LN params f32.
    The attention scale 1/sqrt(head_dim) is folded into the Q rows of
    in_proj_w / in_proj_b (fold it too when porting torch weights)."""
    f32, bf16 = jnp.float32, jnp.bfloat16
    scale = float(embed_dim // num_heads) ** -0.5

    def wmat_f32(k, out_f, in_f, std=0.02):
        # torch Linear weight is (out, in); store (in, out) = (K, N).
        return std * jax.random.normal(k, (in_f, out_f), f32)

    ks = jax.random.split(key, 4 + num_layers)
    patch_dim = num_channels * patch_size * patch_size
    class_pad = _round_up(num_classes, 128)

    head_w = wmat_f32(ks[3], num_classes, embed_dim)
    head_w = jnp.pad(head_w, ((0, 0), (0, class_pad - num_classes))).astype(bf16)

    params = {
        "input_w": wmat_f32(ks[0], embed_dim, patch_dim).astype(bf16),
        "input_b": jnp.zeros((1, embed_dim), f32),
        "cls_token": jax.random.normal(ks[1], (1, 1, embed_dim), f32),
        "pos_embedding": jax.random.normal(ks[2], (1, 1 + num_patches, embed_dim), f32),
        "head_ln_g": jnp.ones((1, embed_dim), f32),
        "head_ln_b": jnp.zeros((1, embed_dim), f32),
        "head_w": head_w,                                  # (E, 128) bf16
        "head_b": jnp.zeros((1, class_pad), f32),
        "layers": [],
    }
    for l in range(num_layers):
        lk = jax.random.split(ks[4 + l], 4)
        in_w = wmat_f32(lk[0], 3 * embed_dim, embed_dim)   # (E, 3E)
        in_w = in_w.at[:, :embed_dim].multiply(scale)      # fold softmax scale
        in_b = jnp.zeros((1, 3 * embed_dim), f32)
        in_b = in_b.at[:, :embed_dim].multiply(scale)      # (no-op for zeros)
        params["layers"].append({
            "ln1_g": jnp.ones((1, embed_dim), f32),
            "ln1_b": jnp.zeros((1, embed_dim), f32),
            "in_proj_w": in_w.astype(bf16),
            "in_proj_b": in_b,
            "out_proj_w": wmat_f32(lk[1], embed_dim, embed_dim).astype(bf16),
            "out_proj_b": jnp.zeros((1, embed_dim), f32),
            "ln2_g": jnp.ones((1, embed_dim), f32),
            "ln2_b": jnp.zeros((1, embed_dim), f32),
            "fc1_w": wmat_f32(lk[2], hidden_dim, embed_dim).astype(bf16),
            "fc1_b": jnp.zeros((1, hidden_dim), f32),
            "fc2_w": wmat_f32(lk[3], embed_dim, hidden_dim).astype(bf16),
            "fc2_b": jnp.zeros((1, embed_dim), f32),
        })
    return params


# ---------------------------------- main -------------------------------------

if __name__ == "__main__":
    B, C, H, W = 2, 4, 16, 16
    patch_size = 4
    embed_dim, hidden_dim = 32, 64
    num_heads, num_layers, num_classes = 4, 2, 10
    num_patches = (H // patch_size) * (W // patch_size)

    key = jax.random.PRNGKey(0)
    kx, kp = jax.random.split(key)
    x = jax.random.normal(kx, (B, C, H, W), jnp.float32)
    params = init_params(kp, embed_dim=embed_dim, hidden_dim=hidden_dim,
                         num_channels=C, num_heads=num_heads,
                         num_layers=num_layers, num_classes=num_classes,
                         patch_size=patch_size, num_patches=num_patches)

    fwd = jax.jit(functools.partial(vit_forward, patch_size=patch_size,
                                    num_heads=num_heads,
                                    num_classes=num_classes))
    out = fwd(x, params)
    jax.block_until_ready(out)
    assert out.shape == (B, num_classes), out.shape
    assert bool(jnp.all(jnp.isfinite(out)))
    print("KERNEL_OK")
</pallas_src>

<mosaic_0001>
module attributes {stable_mosaic.version = 11 : i64} {
  func.func @_copy_probe_kernel(%arg0: i32, %arg1: memref<8x128xf32, #tpu.memory_space<vmem>>, %arg2: memref<8x128xf32, #tpu.memory_space<vmem>>) attributes {dimension_semantics = [#tpu.dimension_semantics<arbitrary>], iteration_bounds = array<i64: 1>, scalar_prefetch = 0 : i64, scratch_operands = 0 : i64, tpu.core_type = #tpu.core_type<tc>, window_params = [{pipeline_mode = #tpu.pipeline_mode<synchronous>, transform_indices = @transform_0, window_bounds = array<i64: 8, 128>}, {pipeline_mode = #tpu.pipeline_mode<synchronous>, transform_indices = @transform_1, window_bounds = array<i64: 8, 128>}]} {
    %c0 = arith.constant 0 : index
    %c0_0 = arith.constant 0 : index
    %0 = vector.load %arg1[%c0, %c0_0] : memref<8x128xf32, #tpu.memory_space<vmem>>, vector<8x128xf32>
    %c0_1 = arith.constant 0 : index
    %c0_2 = arith.constant 0 : index
    %1 = vector.load %arg2[%c0_1, %c0_2] : memref<8x128xf32, #tpu.memory_space<vmem>>, vector<8x128xf32>
    tpu.vector_store %arg2[%c0_1, %c0_2], %0 {strides = array<i32>} : memref<8x128xf32, #tpu.memory_space<vmem>>, vector<8x128xf32>,
    return
  }
  func.func @transform_0(%arg0: i32) -> (i32, i32) {
    %c0_i32 = arith.constant 0 : i32
    %c0_i32_0 = arith.constant 0 : i32
    %c0_i32_1 = arith.constant 0 : i32
    return %c0_i32, %c0_i32_0 : i32, i32
  }
  func.func @transform_1(%arg0: i32) -> (i32, i32) {
    %c0_i32 = arith.constant 0 : i32
    %c0_i32_0 = arith.constant 0 : i32
    %c0_i32_1 = arith.constant 0 : i32
    return %c0_i32, %c0_i32_0 : i32, i32
  }
}

module attributes {stable_mosaic.version = 11 : i64} {
  func.func @_matmul_bias_kernel(%arg0: i32, %arg1: memref<32x64xf32, #tpu.memory_space<vmem>>, %arg2: memref<64x32xbf16, #tpu.memory_space<vmem>>, %arg3: memref<1x32xf32, #tpu.memory_space<vmem>>, %arg4: memref<32x32xf32, #tpu.memory_space<vmem>>) attributes {dimension_semantics = [#tpu.dimension_semantics<parallel>], iteration_bounds = array<i64: 1>, scalar_prefetch = 0 : i64, scratch_operands = 0 : i64, tpu.core_type = #tpu.core_type<tc>, window_params = [{transform_indices = @transform_0, window_bounds = array<i64: 32, 64>}, {pipeline_mode = #tpu.pipeline_mode<synchronous>, transform_indices = @transform_1, window_bounds = array<i64: 64, 32>}, {pipeline_mode = #tpu.pipeline_mode<synchronous>, transform_indices = @transform_2, window_bounds = array<i64: 1, 32>}, {transform_indices = @transform_3, window_bounds = array<i64: 32, 32>}]} {
    %c0 = arith.constant 0 : index
    %c0_0 = arith.constant 0 : index
    %0 = vector.load %arg1[%c0, %c0_0] : memref<32x64xf32, #tpu.memory_space<vmem>>, vector<32x64xf32>
    %1 = arith.truncf %0 : vector<32x64xf32> to vector<32x64xbf16>
    %c0_1 = arith.constant 0 : index
    %c0_2 = arith.constant 0 : index
    %2 = vector.load %arg2[%c0_1, %c0_2] : memref<64x32xbf16, #tpu.memory_space<vmem>>, vector<64x32xbf16>
    %cst = arith.constant dense<0.000000e+00> : vector<32x32xf32>
    %3 = tpu.matmul %1, %2, %cst {dimension_numbers = #tpu.dot_dimension_numbers<[1], [0], [0], [1], [0, 0, 1, 1], [], []>} : vector<32x64xbf16>, vector<64x32xbf16>, vector<32x32xf32> -> vector<32x32xf32>
    %c0_3 = arith.constant 0 : index
    %c0_4 = arith.constant 0 : index
    %4 = vector.load %arg3[%c0_3, %c0_4] : memref<1x32xf32, #tpu.memory_space<vmem>>, vector<1x32xf32>
    %5 = vector.broadcast %4 : vector<1x32xf32> to vector<32x32xf32>
    %6 = arith.addf %3, %5 : vector<32x32xf32>
    %c0_5 = arith.constant 0 : index
    %c0_6 = arith.constant 0 : index
    %7 = vector.load %arg4[%c0_5, %c0_6] : memref<32x32xf32, #tpu.memory_space<vmem>>, vector<32x32xf32>
    tpu.vector_store %arg4[%c0_5, %c0_6], %6 {strides = array<i32>} : memref<32x32xf32, #tpu.memory_space<vmem>>, vector<32x32xf32>,
    return
  }
  func.func @transform_0(%arg0: i32) -> (i32, i32) {
    %c0_i32 = arith.constant 0 : i32
    %c0_i32_0 = arith.constant 0 : i32
    return %arg0, %c0_i32 : i32, i32
  }
  func.func @transform_1(%arg0: i32) -> (i32, i32) {
    %c0_i32 = arith.constant 0 : i32
    %c0_i32_0 = arith.constant 0 : i32
    %c0_i32_1 = arith.constant 0 : i32
    return %c0_i32, %c0_i32_0 : i32, i32
  }
  func.func @transform_2(%arg0: i32) -> (i32, i32) {
    %c0_i32 = arith.constant 0 : i32
    %c0_i32_0 = arith.constant 0 : i32
    %c0_i32_1 = arith.constant 0 : i32
    return %c0_i32, %c0_i32_0 : i32, i32
  }
  func.func @transform_3(%arg0: i32) -> (i32, i32) {
    %c0_i32 = arith.constant 0 : i32
    %c0_i32_0 = arith.constant 0 : i32
    return %arg0, %c0_i32 : i32, i32
  }
}

module attributes {stable_mosaic.version = 11 : i64} {
  func.func @_attn_outproj_kernel(%arg0: i32, %arg1: memref<1x32x96xbf16, #tpu.memory_space<vmem>>, %arg2: memref<1x32x32xf32, #tpu.memory_space<vmem>>, %arg3: memref<32x32xbf16, #tpu.memory_space<vmem>>, %arg4: memref<1x32xf32, #tpu.memory_space<vmem>>, %arg5: memref<1x32x32xf32, #tpu.memory_space<vmem>>) attributes {dimension_semantics = [#tpu.dimension_semantics<parallel>], iteration_bounds = array<i64: 2>, scalar_prefetch = 0 : i64, scratch_operands = 0 : i64, tpu.core_type = #tpu.core_type<tc>, window_params = [{transform_indices = @transform_0, window_bounds = array<i64: 1, 32, 96>}, {transform_indices = @transform_1, window_bounds = array<i64: 1, 32, 32>}, {pipeline_mode = #tpu.pipeline_mode<synchronous>, transform_indices = @transform_2, window_bounds = array<i64: 32, 32>}, {pipeline_mode = #tpu.pipeline_mode<synchronous>, transform_indices = @transform_3, window_bounds = array<i64: 1, 32>}, {transform_indices = @transform_4, window_bounds = array<i64: 1, 32, 32>}]} {
    %c0 = arith.constant 0 : index
    %c0_0 = arith.constant 0 : index
    %c0_1 = arith.constant 0 : index
    %0 = vector.load %arg1[%c0, %c0_0, %c0_1] : memref<1x32x96xbf16, #tpu.memory_space<vmem>>, vector<1x32x96xbf16>
    %1 = vector.shape_cast %0 : vector<1x32x96xbf16> to vector<32x96xbf16>
    %2 = tpu.iota {dimensions = array<i32: 1>} : vector<1x32xi32>
    %c17_i32 = arith.constant 17 : i32
    %3 = vector.broadcast %c17_i32 : i32 to vector<1x32xi32>
    %4 = arith.cmpi slt, %2, %3 : vector<1x32xi32>
    %cst = arith.constant 0.000000e+00 : f32
    %cst_2 = arith.constant -1.000000e+30 : f32
    %5 = vector.broadcast %cst : f32 to vector<1x32xf32>
    %6 = vector.broadcast %cst_2 : f32 to vector<1x32xf32>
    %7 = arith.select %4, %5, %6 : vector<1x32xi1>, vector<1x32xf32>
    %cst_3 = arith.constant 0.000000e+00 : f32
    %8 = vector.broadcast %cst_3 : f32 to vector<32x32xf32>
    %9 = vector.extract_strided_slice %1 {offsets = [0, 0], sizes = [32, 8], strides = [1, 1]} : vector<32x96xbf16> to vector<32x8xbf16>
    %10 = vector.extract_strided_slice %1 {offsets = [0, 32], sizes = [32, 8], strides = [1, 1]} : vector<32x96xbf16> to vector<32x8xbf16>
    %11 = vector.extract_strided_slice %1 {offsets = [0, 64], sizes = [32, 8], strides = [1, 1]} : vector<32x96xbf16> to vector<32x8xbf16>
    %cst_4 = arith.constant dense<0.000000e+00> : vector<32x32xf32>
    %12 = tpu.matmul %9, %10, %cst_4 {dimension_numbers = #tpu.dot_dimension_numbers<[1], [1], [0], [0], [0, 0, 1, 0], [], []>} : vector<32x8xbf16>, vector<32x8xbf16>, vector<32x32xf32> -> vector<32x32xf32>
    %13 = vector.broadcast %7 : vector<1x32xf32> to vector<32x32xf32>
    %14 = arith.addf %12, %13 : vector<32x32xf32>
    %cst_5 = arith.constant dense<0xFF800000> : vector<32xf32>
    %15 = vector.multi_reduction <maximumf>, %14, %cst_5 [1] : vector<32x32xf32> to vector<32xf32>
    %16 = vector.shape_cast %15 : vector<32xf32> to vector<32x1xf32>
    %17 = vector.broadcast %16 : vector<32x1xf32> to vector<32x32xf32>
    %18 = arith.subf %14, %17 : vector<32x32xf32>
    %19 = math.exp %18 : vector<32x32xf32>
    %cst_6 = arith.constant dense<0.000000e+00> : vector<32xf32>
    %20 = vector.multi_reduction <add>, %19, %cst_6 [1] : vector<32x32xf32> to vector<32xf32>
    %21 = vector.shape_cast %20 : vector<32xf32> to vector<32x1xf32>
    %22 = tpu.reciprocal %21 {approx = true} : vector<32x1xf32> -> vector<32x1xf32>
    %23 = vector.broadcast %22 : vector<32x1xf32> to vector<32x32xf32>
    %24 = arith.mulf %19, %23 : vector<32x32xf32>
    %25 = arith.truncf %24 : vector<32x32xf32> to vector<32x32xbf16>
    %cst_7 = arith.constant dense<0.000000e+00> : vector<32x8xf32>
    %26 = tpu.matmul %25, %11, %cst_7 {dimension_numbers = #tpu.dot_dimension_numbers<[1], [0], [0], [1], [0, 0, 1, 1], [], []>} : vector<32x32xbf16>, vector<32x8xbf16>, vector<32x8xf32> -> vector<32x8xf32>
    %27 = arith.truncf %26 : vector<32x8xf32> to vector<32x8xbf16>
    %c0_8 = arith.constant 0 : index
    %c0_9 = arith.constant 0 : index
    %28 = vector.load %arg3[%c0_8, %c0_9] : memref<32x32xbf16, #tpu.memory_space<vmem>>, vector<8x32xbf16>
    %cst_10 = arith.constant dense<0.000000e+00> : vector<32x32xf32>
    %29 = tpu.matmul %27, %28, %cst_10 {dimension_numbers = #tpu.dot_dimension_numbers<[1], [0], [0], [1], [0, 0, 1, 1], [], []>} : vector<32x8xbf16>, vector<8x32xbf16>, vector<32x32xf32> -> vector<32x32xf32>
    %30 = arith.addf %8, %29 : vector<32x32xf32>
    %31 = vector.extract_strided_slice %1 {offsets = [0, 8], sizes = [32, 8], strides = [1, 1]} : vector<32x96xbf16> to vector<32x8xbf16>
    %32 = vector.extract_strided_slice %1 {offsets = [0, 40], sizes = [32, 8], strides = [1, 1]} : vector<32x96xbf16> to vector<32x8xbf16>
    %33 = vector.extract_strided_slice %1 {offsets = [0, 72], sizes = [32, 8], strides = [1, 1]} : vector<32x96xbf16> to vector<32x8xbf16>
    %cst_11 = arith.constant dense<0.000000e+00> : vector<32x32xf32>
    %34 = tpu.matmul %31, %32, %cst_11 {dimension_numbers = #tpu.dot_dimension_numbers<[1], [1], [0], [0], [0, 0, 1, 0], [], []>} : vector<32x8xbf16>, vector<32x8xbf16>, vector<32x32xf32> -> vector<32x32xf32>
    %35 = vector.broadcast %7 : vector<1x32xf32> to vector<32x32xf32>
    %36 = arith.addf %34, %35 : vector<32x32xf32>
    %cst_12 = arith.constant dense<0xFF800000> : vector<32xf32>
    %37 = vector.multi_reduction <maximumf>, %36, %cst_12 [1] : vector<32x32xf32> to vector<32xf32>
    %38 = vector.shape_cast %37 : vector<32xf32> to vector<32x1xf32>
    %39 = vector.broadcast %38 : vector<32x1xf32> to vector<32x32xf32>
    %40 = arith.subf %36, %39 : vector<32x32xf32>
    %41 = math.exp %40 : vector<32x32xf32>
    %cst_13 = arith.constant dense<0.000000e+00> : vector<32xf32>
    %42 = vector.multi_reduction <add>, %41, %cst_13 [1] : vector<32x32xf32> to vector<32xf32>
    %43 = vector.shape_cast %42 : vector<32xf32> to vector<32x1xf32>
    %44 = tpu.reciprocal %43 {approx = true} : vector<32x1xf32> -> vector<32x1xf32>
    %45 = vector.broadcast %44 : vector<32x1xf32> to vector<32x32xf32>
    %46 = arith.mulf %41, %45 : vector<32x32xf32>
    %47 = arith.truncf %46 : vector<32x32xf32> to vector<32x32xbf16>
    %cst_14 = arith.constant dense<0.000000e+00> : vector<32x8xf32>
    %48 = tpu.matmul %47, %33, %cst_14 {dimension_numbers = #tpu.dot_dimension_numbers<[1], [0], [0], [1], [0, 0, 1, 1], [], []>} : vector<32x32xbf16>, vector<32x8xbf16>, vector<32x8xf32> -> vector<32x8xf32>
    %49 = arith.truncf %48 : vector<32x8xf32> to vector<32x8xbf16>
    %c8 = arith.constant 8 : index
    %c0_15 = arith.constant 0 : index
    %50 = vector.load %arg3[%c8, %c0_15] : memref<32x32xbf16, #tpu.memory_space<vmem>>, vector<8x32xbf16>
    %cst_16 = arith.constant dense<0.000000e+00> : vector<32x32xf32>
    %51 = tpu.matmul %49, %50, %cst_16 {dimension_numbers = #tpu.dot_dimension_numbers<[1], [0], [0], [1], [0, 0, 1, 1], [], []>} : vector<32x8xbf16>, vector<8x32xbf16>, vector<32x32xf32> -> vector<32x32xf32>
    %52 = arith.addf %30, %51 : vector<32x32xf32>
    %53 = vector.extract_strided_slice %1 {offsets = [0, 16], sizes = [32, 8], strides = [1, 1]} : vector<32x96xbf16> to vector<32x8xbf16>
    %54 = vector.extract_strided_slice %1 {offsets = [0, 48], sizes = [32, 8], strides = [1, 1]} : vector<32x96xbf16> to vector<32x8xbf16>
    %55 = vector.extract_strided_slice %1 {offsets = [0, 80], sizes = [32, 8], strides = [1, 1]} : vector<32x96xbf16> to vector<32x8xbf16>
    %cst_17 = arith.constant dense<0.000000e+00> : vector<32x32xf32>
    %56 = tpu.matmul %53, %54, %cst_17 {dimension_numbers = #tpu.dot_dimension_numbers<[1], [1], [0], [0], [0, 0, 1, 0], [], []>} : vector<32x8xbf16>, vector<32x8xbf16>, vector<32x32xf32> -> vector<32x32xf32>
    %57 = vector.broadcast %7 : vector<1x32xf32> to vector<32x32xf32>
    %58 = arith.addf %56, %57 : vector<32x32xf32>
    %cst_18 = arith.constant dense<0xFF800000> : vector<32xf32>
    %59 = vector.multi_reduction <maximumf>, %58, %cst_18 [1] : vector<32x32xf32> to vector<32xf32>
    %60 = vector.shape_cast %59 : vector<32xf32> to vector<32x1xf32>
    %61 = vector.broadcast %60 : vector<32x1xf32> to vector<32x32xf32>
    %62 = arith.subf %58, %61 : vector<32x32xf32>
    %63 = math.exp %62 : vector<32x32xf32>
    %cst_19 = arith.constant dense<0.000000e+00> : vector<32xf32>
    %64 = vector.multi_reduction <add>, %63, %cst_19 [1] : vector<32x32xf32> to vector<32xf32>
    %65 = vector.shape_cast %64 : vector<32xf32> to vector<32x1xf32>
    %66 = tpu.reciprocal %65 {approx = true} : vector<32x1xf32> -> vector<32x1xf32>
    %67 = vector.broadcast %66 : vector<32x1xf32> to vector<32x32xf32>
    %68 = arith.mulf %63, %67 : vector<32x32xf32>
    %69 = arith.truncf %68 : vector<32x32xf32> to vector<32x32xbf16>
    %cst_20 = arith.constant dense<0.000000e+00> : vector<32x8xf32>
    %70 = tpu.matmul %69, %55, %cst_20 {dimension_numbers = #tpu.dot_dimension_numbers<[1], [0], [0], [1], [0, 0, 1, 1], [], []>} : vector<32x32xbf16>, vector<32x8xbf16>, vector<32x8xf32> -> vector<32x8xf32>
    %71 = arith.truncf %70 : vector<32x8xf32> to vector<32x8xbf16>
    %c16 = arith.constant 16 : index
    %c0_21 = arith.constant 0 : index
    %72 = vector.load %arg3[%c16, %c0_21] : memref<32x32xbf16, #tpu.memory_space<vmem>>, vector<8x32xbf16>
    %cst_22 = arith.constant dense<0.000000e+00> : vector<32x32xf32>
    %73 = tpu.matmul %71, %72, %cst_22 {dimension_numbers = #tpu.dot_dimension_numbers<[1], [0], [0], [1], [0, 0, 1, 1], [], []>} : vector<32x8xbf16>, vector<8x32xbf16>, vector<32x32xf32> -> vector<32x32xf32>
    %74 = arith.addf %52, %73 : vector<32x32xf32>
    %75 = vector.extract_strided_slice %1 {offsets = [0, 24], sizes = [32, 8], strides = [1, 1]} : vector<32x96xbf16> to vector<32x8xbf16>
    %76 = vector.extract_strided_slice %1 {offsets = [0, 56], sizes = [32, 8], strides = [1, 1]} : vector<32x96xbf16> to vector<32x8xbf16>
    %77 = vector.extract_strided_slice %1 {offsets = [0, 88], sizes = [32, 8], strides = [1, 1]} : vector<32x96xbf16> to vector<32x8xbf16>
    %cst_23 = arith.constant dense<0.000000e+00> : vector<32x32xf32>
    %78 = tpu.matmul %75, %76, %cst_23 {dimension_numbers = #tpu.dot_dimension_numbers<[1], [1], [0], [0], [0, 0, 1, 0], [], []>} : vector<32x8xbf16>, vector<32x8xbf16>, vector<32x32xf32> -> vector<32x32xf32>
    %79 = vector.broadcast %7 : vector<1x32xf32> to vector<32x32xf32>
    %80 = arith.addf %78, %79 : vector<32x32xf32>
    %cst_24 = arith.constant dense<0xFF800000> : vector<32xf32>
    %81 = vector.multi_reduction <maximumf>, %80, %cst_24 [1] : vector<32x32xf32> to vector<32xf32>
    %82 = vector.shape_cast %81 : vector<32xf32> to vector<32x1xf32>
    %83 = vector.broadcast %82 : vector<32x1xf32> to vector<32x32xf32>
    %84 = arith.subf %80, %83 : vector<32x32xf32>
    %85 = math.exp %84 : vector<32x32xf32>
    %cst_25 = arith.constant dense<0.000000e+00> : vector<32xf32>
    %86 = vector.multi_reduction <add>, %85, %cst_25 [1] : vector<32x32xf32> to vector<32xf32>
    %87 = vector.shape_cast %86 : vector<32xf32> to vector<32x1xf32>
    %88 = tpu.reciprocal %87 {approx = true} : vector<32x1xf32> -> vector<32x1xf32>
    %89 = vector.broadcast %88 : vector<32x1xf32> to vector<32x32xf32>
    %90 = arith.mulf %85, %89 : vector<32x32xf32>
    %91 = arith.truncf %90 : vector<32x32xf32> to vector<32x32xbf16>
    %cst_26 = arith.constant dense<0.000000e+00> : vector<32x8xf32>
    %92 = tpu.matmul %91, %77, %cst_26 {dimension_numbers = #tpu.dot_dimension_numbers<[1], [0], [0], [1], [0, 0, 1, 1], [], []>} : vector<32x32xbf16>, vector<32x8xbf16>, vector<32x8xf32> -> vector<32x8xf32>
    %93 = arith.truncf %92 : vector<32x8xf32> to vector<32x8xbf16>
    %c24 = arith.constant 24 : index
    %c0_27 = arith.constant 0 : index
    %94 = vector.load %arg3[%c24, %c0_27] : memref<32x32xbf16, #tpu.memory_space<vmem>>, vector<8x32xbf16>
    %cst_28 = arith.constant dense<0.000000e+00> : vector<32x32xf32>
    %95 = tpu.matmul %93, %94, %cst_28 {dimension_numbers = #tpu.dot_dimension_numbers<[1], [0], [0], [1], [0, 0, 1, 1], [], []>} : vector<32x8xbf16>, vector<8x32xbf16>, vector<32x32xf32> -> vector<32x32xf32>
    %96 = arith.addf %74, %95 : vector<32x32xf32>
    %c0_29 = arith.constant 0 : index
    %c0_30 = arith.constant 0 : index
    %c0_31 = arith.constant 0 : index
    %97 = vector.load %arg2[%c0_29, %c0_30, %c0_31] : memref<1x32x32xf32, #tpu.memory_space<vmem>>, vector<1x32x32xf32>
    %98 = vector.shape_cast %97 : vector<1x32x32xf32> to vector<32x32xf32>
    %99 = arith.addf %98, %96 : vector<32x32xf32>
    %c0_32 = arith.constant 0 : index
    %c0_33 = arith.constant 0 : index
    %100 = vector.load %arg4[%c0_32, %c0_33] : memref<1x32xf32, #tpu.memory_space<vmem>>, vector<1x32xf32>
    %101 = vector.broadcast %100 : vector<1x32xf32> to vector<32x32xf32>
    %102 = arith.addf %99, %101 : vector<32x32xf32>
    %c0_34 = arith.constant 0 : index
    %c0_35 = arith.constant 0 : index
    %c0_36 = arith.constant 0 : index
    %103 = vector.load %arg5[%c0_34, %c0_35, %c0_36] : memref<1x32x32xf32, #tpu.memory_space<vmem>>, vector<1x32x32xf32>
    %104 = vector.shape_cast %103 : vector<1x32x32xf32> to vector<32x32xf32>
    %105 = vector.shape_cast %102 : vector<32x32xf32> to vector<1x32x32xf32>
    tpu.vector_store %arg5[%c0_34, %c0_35, %c0_36], %105 {strides = array<i32>} : memref<1x32x32xf32, #tpu.memory_space<vmem>>, vector<1x32x32xf32>,
    return
  }
  func.func @transform_0(%arg0: i32) -> (i32, i32, i32) {
    %c0_i32 = arith.constant 0 : i32
    %c0_i32_0 = arith.constant 0 : i32
    %c0_i32_1 = arith.constant 0 : i32
    return %arg0, %c0_i32, %c0_i32_0 : i32, i32, i32
  }
  func.func @transform_1(%arg0: i32) -> (i32, i32, i32) {
    %c0_i32 = arith.constant 0 : i32
    %c0_i32_0 = arith.constant 0 : i32
    %c0_i32_1 = arith.constant 0 : i32
    return %arg0, %c0_i32, %c0_i32_0 : i32, i32, i32
  }
  func.func @transform_2(%arg0: i32) -> (i32, i32) {
    %c0_i32 = arith.constant 0 : i32
    %c0_i32_0 = arith.constant 0 : i32
    %c0_i32_1 = arith.constant 0 : i32
    return %c0_i32, %c0_i32_0 : i32, i32
  }
  func.func @transform_3(%arg0: i32) -> (i32, i32) {
    %c0_i32 = arith.constant 0 : i32
    %c0_i32_0 = arith.constant 0 : i32
    %c0_i32_1 = arith.constant 0 : i32
    return %c0_i32, %c0_i32_0 : i32, i32
  }
  func.func @transform_4(%arg0: i32) -> (i32, i32, i32) {
    %c0_i32 = arith.constant 0 : i32
    %c0_i32_0 = arith.constant 0 : i32
    %c0_i32_1 = arith.constant 0 : i32
    return %arg0, %c0_i32, %c0_i32_0 : i32, i32, i32
  }
}

module attributes {stable_mosaic.version = 11 : i64} {
  func.func @_ln_matmul_kernel(%arg0: i32, %arg1: memref<64x32xf32, #tpu.memory_space<vmem>>, %arg2: memref<1x32xf32, #tpu.memory_space<vmem>>, %arg3: memref<1x32xf32, #tpu.memory_space<vmem>>, %arg4: memref<32x96xbf16, #tpu.memory_space<vmem>>, %arg5: memref<1x96xf32, #tpu.memory_space<vmem>>, %arg6: memref<64x96xbf16, #tpu.memory_space<vmem>>) attributes {dimension_semantics = [#tpu.dimension_semantics<parallel>], iteration_bounds = array<i64: 1>, scalar_prefetch = 0 : i64, scratch_operands = 0 : i64, tpu.core_type = #tpu.core_type<tc>, window_params = [{transform_indices = @transform_0, window_bounds = array<i64: 64, 32>}, {pipeline_mode = #tpu.pipeline_mode<synchronous>, transform_indices = @transform_1, window_bounds = array<i64: 1, 32>}, {pipeline_mode = #tpu.pipeline_mode<synchronous>, transform_indices = @transform_2, window_bounds = array<i64: 1, 32>}, {pipeline_mode = #tpu.pipeline_mode<synchronous>, transform_indices = @transform_3, window_bounds = array<i64: 32, 96>}, {pipeline_mode = #tpu.pipeline_mode<synchronous>, transform_indices = @transform_4, window_bounds = array<i64: 1, 96>}, {transform_indices = @transform_5, window_bounds = array<i64: 64, 96>}]} {
    %c0 = arith.constant 0 : index
    %c0_0 = arith.constant 0 : index
    %0 = vector.load %arg1[%c0, %c0_0] : memref<64x32xf32, #tpu.memory_space<vmem>>, vector<64x32xf32>
    %cst = arith.constant dense<0.000000e+00> : vector<64xf32>
    %1 = vector.multi_reduction <add>, %0, %cst [1] : vector<64x32xf32> to vector<64xf32>
    %2 = vector.shape_cast %1 : vector<64xf32> to vector<64x1xf32>
    %cst_1 = arith.constant 3.200000e+01 : f32
    %3 = vector.broadcast %cst_1 : f32 to vector<64x1xf32>
    %4 = arith.divf %2, %3 : vector<64x1xf32>
    %5 = vector.broadcast %4 : vector<64x1xf32> to vector<64x32xf32>
    %6 = arith.subf %0, %5 : vector<64x32xf32>
    %7 = arith.mulf %6, %6 : vector<64x32xf32>
    %cst_2 = arith.constant dense<0.000000e+00> : vector<64xf32>
    %8 = vector.multi_reduction <add>, %7, %cst_2 [1] : vector<64x32xf32> to vector<64xf32>
    %9 = vector.shape_cast %8 : vector<64xf32> to vector<64x1xf32>
    %cst_3 = arith.constant 3.200000e+01 : f32
    %10 = vector.broadcast %cst_3 : f32 to vector<64x1xf32>
    %11 = arith.divf %9, %10 : vector<64x1xf32>
    %cst_4 = arith.constant 9.99999974E-6 : f32
    %12 = vector.broadcast %cst_4 : f32 to vector<64x1xf32>
    %13 = arith.addf %11, %12 : vector<64x1xf32>
    %14 = math.rsqrt %13 : vector<64x1xf32>
    %15 = vector.broadcast %14 : vector<64x1xf32> to vector<64x32xf32>
    %16 = arith.mulf %6, %15 : vector<64x32xf32>
    %c0_5 = arith.constant 0 : index
    %c0_6 = arith.constant 0 : index
    %17 = vector.load %arg2[%c0_5, %c0_6] : memref<1x32xf32, #tpu.memory_space<vmem>>, vector<1x32xf32>
    %18 = vector.broadcast %17 : vector<1x32xf32> to vector<64x32xf32>
    %19 = arith.mulf %16, %18 : vector<64x32xf32>
    %c0_7 = arith.constant 0 : index
    %c0_8 = arith.constant 0 : index
    %20 = vector.load %arg3[%c0_7, %c0_8] : memref<1x32xf32, #tpu.memory_space<vmem>>, vector<1x32xf32>
    %21 = vector.broadcast %20 : vector<1x32xf32> to vector<64x32xf32>
    %22 = arith.addf %19, %21 : vector<64x32xf32>
    %23 = arith.truncf %22 : vector<64x32xf32> to vector<64x32xbf16>
    %c0_9 = arith.constant 0 : index
    %c0_10 = arith.constant 0 : index
    %24 = vector.load %arg4[%c0_9, %c0_10] : memref<32x96xbf16, #tpu.memory_space<vmem>>, vector<32x96xbf16>
    %cst_11 = arith.constant dense<0.000000e+00> : vector<64x96xf32>
    %25 = tpu.matmul %23, %24, %cst_11 {dimension_numbers = #tpu.dot_dimension_numbers<[1], [0], [0], [1], [0, 0, 1, 1], [], []>} : vector<64x32xbf16>, vector<32x96xbf16>, vector<64x96xf32> -> vector<64x96xf32>
    %c0_12 = arith.constant 0 : index
    %c0_13 = arith.constant 0 : index
    %26 = vector.load %arg5[%c0_12, %c0_13] : memref<1x96xf32, #tpu.memory_space<vmem>>, vector<1x96xf32>
    %27 = vector.broadcast %26 : vector<1x96xf32> to vector<64x96xf32>
    %28 = arith.addf %25, %27 : vector<64x96xf32>
    %29 = arith.truncf %28 : vector<64x96xf32> to vector<64x96xbf16>
    %c0_14 = arith.constant 0 : index
    %c0_15 = arith.constant 0 : index
    %30 = vector.load %arg6[%c0_14, %c0_15] : memref<64x96xbf16, #tpu.memory_space<vmem>>, vector<64x96xbf16>
    tpu.vector_store %arg6[%c0_14, %c0_15], %29 {strides = array<i32>} : memref<64x96xbf16, #tpu.memory_space<vmem>>, vector<64x96xbf16>,
    return
  }
  func.func @transform_0(%arg0: i32) -> (i32, i32) {
    %c0_i32 = arith.constant 0 : i32
    %c0_i32_0 = arith.constant 0 : i32
    return %arg0, %c0_i32 : i32, i32
  }
  func.func @transform_1(%arg0: i32) -> (i32, i32) {
    %c0_i32 = arith.constant 0 : i32
    %c0_i32_0 = arith.constant 0 : i32
    %c0_i32_1 = arith.constant 0 : i32
    return %c0_i32, %c0_i32_0 : i32, i32
  }
  func.func @transform_2(%arg0: i32) -> (i32, i32) {
    %c0_i32 = arith.constant 0 : i32
    %c0_i32_0 = arith.constant 0 : i32
    %c0_i32_1 = arith.constant 0 : i32
    return %c0_i32, %c0_i32_0 : i32, i32
  }
  func.func @transform_3(%arg0: i32) -> (i32, i32) {
    %c0_i32 = arith.constant 0 : i32
    %c0_i32_0 = arith.constant 0 : i32
    %c0_i32_1 = arith.constant 0 : i32
    return %c0_i32, %c0_i32_0 : i32, i32
  }
  func.func @transform_4(%arg0: i32) -> (i32, i32) {
    %c0_i32 = arith.constant 0 : i32
    %c0_i32_0 = arith.constant 0 : i32
    %c0_i32_1 = arith.constant 0 : i32
    return %c0_i32, %c0_i32_0 : i32, i32
  }
  func.func @transform_5(%arg0: i32) -> (i32, i32) {
    %c0_i32 = arith.constant 0 : i32
    %c0_i32_0 = arith.constant 0 : i32
    return %arg0, %c0_i32 : i32, i32
  }
}

module attributes {stable_mosaic.version = 11 : i64} {
  func.func @_ln_ffn_residual_kernel(%arg0: i32, %arg1: memref<64x32xf32, #tpu.memory_space<vmem>>, %arg2: memref<1x32xf32, #tpu.memory_space<vmem>>, %arg3: memref<1x32xf32, #tpu.memory_space<vmem>>, %arg4: memref<32x64xbf16, #tpu.memory_space<vmem>>, %arg5: memref<1x64xf32, #tpu.memory_space<vmem>>, %arg6: memref<64x32xbf16, #tpu.memory_space<vmem>>, %arg7: memref<1x32xf32, #tpu.memory_space<vmem>>, %arg8: memref<64x32xf32, #tpu.memory_space<vmem>>) attributes {dimension_semantics = [#tpu.dimension_semantics<parallel>], iteration_bounds = array<i64: 1>, scalar_prefetch = 0 : i64, scratch_operands = 0 : i64, tpu.core_type = #tpu.core_type<tc>, window_params = [{transform_indices = @transform_0, window_bounds = array<i64: 64, 32>}, {pipeline_mode = #tpu.pipeline_mode<synchronous>, transform_indices = @transform_1, window_bounds = array<i64: 1, 32>}, {pipeline_mode = #tpu.pipeline_mode<synchronous>, transform_indices = @transform_2, window_bounds = array<i64: 1, 32>}, {pipeline_mode = #tpu.pipeline_mode<synchronous>, transform_indices = @transform_3, window_bounds = array<i64: 32, 64>}, {pipeline_mode = #tpu.pipeline_mode<synchronous>, transform_indices = @transform_4, window_bounds = array<i64: 1, 64>}, {pipeline_mode = #tpu.pipeline_mode<synchronous>, transform_indices = @transform_5, window_bounds = array<i64: 64, 32>}, {pipeline_mode = #tpu.pipeline_mode<synchronous>, transform_indices = @transform_6, window_bounds = array<i64: 1, 32>}, {transform_indices = @transform_7, window_bounds = array<i64: 64, 32>}]} {
    %c0 = arith.constant 0 : index
    %c0_0 = arith.constant 0 : index
    %0 = vector.load %arg1[%c0, %c0_0] : memref<64x32xf32, #tpu.memory_space<vmem>>, vector<64x32xf32>
    %cst = arith.constant dense<0.000000e+00> : vector<64xf32>
    %1 = vector.multi_reduction <add>, %0, %cst [1] : vector<64x32xf32> to vector<64xf32>
    %2 = vector.shape_cast %1 : vector<64xf32> to vector<64x1xf32>
    %cst_1 = arith.constant 3.200000e+01 : f32
    %3 = vector.broadcast %cst_1 : f32 to vector<64x1xf32>
    %4 = arith.divf %2, %3 : vector<64x1xf32>
    %5 = vector.broadcast %4 : vector<64x1xf32> to vector<64x32xf32>
    %6 = arith.subf %0, %5 : vector<64x32xf32>
    %7 = arith.mulf %6, %6 : vector<64x32xf32>
    %cst_2 = arith.constant dense<0.000000e+00> : vector<64xf32>
    %8 = vector.multi_reduction <add>, %7, %cst_2 [1] : vector<64x32xf32> to vector<64xf32>
    %9 = vector.shape_cast %8 : vector<64xf32> to vector<64x1xf32>
    %cst_3 = arith.constant 3.200000e+01 : f32
    %10 = vector.broadcast %cst_3 : f32 to vector<64x1xf32>
    %11 = arith.divf %9, %10 : vector<64x1xf32>
    %cst_4 = arith.constant 9.99999974E-6 : f32
    %12 = vector.broadcast %cst_4 : f32 to vector<64x1xf32>
    %13 = arith.addf %11, %12 : vector<64x1xf32>
    %14 = math.rsqrt %13 : vector<64x1xf32>
    %15 = vector.broadcast %14 : vector<64x1xf32> to vector<64x32xf32>
    %16 = arith.mulf %6, %15 : vector<64x32xf32>
    %c0_5 = arith.constant 0 : index
    %c0_6 = arith.constant 0 : index
    %17 = vector.load %arg2[%c0_5, %c0_6] : memref<1x32xf32, #tpu.memory_space<vmem>>, vector<1x32xf32>
    %18 = vector.broadcast %17 : vector<1x32xf32> to vector<64x32xf32>
    %19 = arith.mulf %16, %18 : vector<64x32xf32>
    %c0_7 = arith.constant 0 : index
    %c0_8 = arith.constant 0 : index
    %20 = vector.load %arg3[%c0_7, %c0_8] : memref<1x32xf32, #tpu.memory_space<vmem>>, vector<1x32xf32>
    %21 = vector.broadcast %20 : vector<1x32xf32> to vector<64x32xf32>
    %22 = arith.addf %19, %21 : vector<64x32xf32>
    %23 = arith.truncf %22 : vector<64x32xf32> to vector<64x32xbf16>
    %c0_9 = arith.constant 0 : index
    %c0_10 = arith.constant 0 : index
    %24 = vector.load %arg4[%c0_9, %c0_10] : memref<32x64xbf16, #tpu.memory_space<vmem>>, vector<32x64xbf16>
    %cst_11 = arith.constant dense<0.000000e+00> : vector<64x64xf32>
    %25 = tpu.matmul %23, %24, %cst_11 {dimension_numbers = #tpu.dot_dimension_numbers<[1], [0], [0], [1], [0, 0, 1, 1], [], []>} : vector<64x32xbf16>, vector<32x64xbf16>, vector<64x64xf32> -> vector<64x64xf32>
    %c0_12 = arith.constant 0 : index
    %c0_13 = arith.constant 0 : index
    %26 = vector.load %arg5[%c0_12, %c0_13] : memref<1x64xf32, #tpu.memory_space<vmem>>, vector<1x64xf32>
    %27 = vector.broadcast %26 : vector<1x64xf32> to vector<64x64xf32>
    %28 = arith.addf %25, %27 : vector<64x64xf32>
    %cst_14 = arith.constant 5.000000e-01 : f32
    %29 = vector.broadcast %cst_14 : f32 to vector<64x64xf32>
    %30 = arith.mulf %29, %28 : vector<64x64xf32>
    %cst_15 = arith.constant 0.707106769 : f32
    %31 = vector.broadcast %cst_15 : f32 to vector<64x64xf32>
    %32 = arith.mulf %28, %31 : vector<64x64xf32>
    %33 = math.erf %32 : vector<64x64xf32>
    %cst_16 = arith.constant 1.000000e+00 : f32
    %34 = vector.broadcast %cst_16 : f32 to vector<64x64xf32>
    %35 = arith.addf %34, %33 : vector<64x64xf32>
    %36 = arith.mulf %30, %35 : vector<64x64xf32>
    %37 = arith.truncf %36 : vector<64x64xf32> to vector<64x64xbf16>
    %c0_17 = arith.constant 0 : index
    %c0_18 = arith.constant 0 : index
    %38 = vector.load %arg6[%c0_17, %c0_18] : memref<64x32xbf16, #tpu.memory_space<vmem>>, vector<64x32xbf16>
    %cst_19 = arith.constant dense<0.000000e+00> : vector<64x32xf32>
    %39 = tpu.matmul %37, %38, %cst_19 {dimension_numbers = #tpu.dot_dimension_numbers<[1], [0], [0], [1], [0, 0, 1, 1], [], []>} : vector<64x64xbf16>, vector<64x32xbf16>, vector<64x32xf32> -> vector<64x32xf32>
    %c0_20 = arith.constant 0 : index
    %c0_21 = arith.constant 0 : index
    %40 = vector.load %arg7[%c0_20, %c0_21] : memref<1x32xf32, #tpu.memory_space<vmem>>, vector<1x32xf32>
    %41 = vector.broadcast %40 : vector<1x32xf32> to vector<64x32xf32>
    %42 = arith.addf %39, %41 : vector<64x32xf32>
    %43 = arith.addf %0, %42 : vector<64x32xf32>
    %c0_22 = arith.constant 0 : index
    %c0_23 = arith.constant 0 : index
    %44 = vector.load %arg8[%c0_22, %c0_23] : memref<64x32xf32, #tpu.memory_space<vmem>>, vector<64x32xf32>
    tpu.vector_store %arg8[%c0_22, %c0_23], %43 {strides = array<i32>} : memref<64x32xf32, #tpu.memory_space<vmem>>, vector<64x32xf32>,
    return
  }
  func.func @transform_0(%arg0: i32) -> (i32, i32) {
    %c0_i32 = arith.constant 0 : i32
    %c0_i32_0 = arith.constant 0 : i32
    return %arg0, %c0_i32 : i32, i32
  }
  func.func @transform_1(%arg0: i32) -> (i32, i32) {
    %c0_i32 = arith.constant 0 : i32
    %c0_i32_0 = arith.constant 0 : i32
    %c0_i32_1 = arith.constant 0 : i32
    return %c0_i32, %c0_i32_0 : i32, i32
  }
  func.func @transform_2(%arg0: i32) -> (i32, i32) {
    %c0_i32 = arith.constant 0 : i32
    %c0_i32_0 = arith.constant 0 : i32
    %c0_i32_1 = arith.constant 0 : i32
    return %c0_i32, %c0_i32_0 : i32, i32
  }
  func.func @transform_3(%arg0: i32) -> (i32, i32) {
    %c0_i32 = arith.constant 0 : i32
    %c0_i32_0 = arith.constant 0 : i32
    %c0_i32_1 = arith.constant 0 : i32
    return %c0_i32, %c0_i32_0 : i32, i32
  }
  func.func @transform_4(%arg0: i32) -> (i32, i32) {
    %c0_i32 = arith.constant 0 : i32
    %c0_i32_0 = arith.constant 0 : i32
    %c0_i32_1 = arith.constant 0 : i32
    return %c0_i32, %c0_i32_0 : i32, i32
  }
  func.func @transform_5(%arg0: i32) -> (i32, i32) {
    %c0_i32 = arith.constant 0 : i32
    %c0_i32_0 = arith.constant 0 : i32
    %c0_i32_1 = arith.constant 0 : i32
    return %c0_i32, %c0_i32_0 : i32, i32
  }
  func.func @transform_6(%arg0: i32) -> (i32, i32) {
    %c0_i32 = arith.constant 0 : i32
    %c0_i32_0 = arith.constant 0 : i32
    %c0_i32_1 = arith.constant 0 : i32
    return %c0_i32, %c0_i32_0 : i32, i32
  }
  func.func @transform_7(%arg0: i32) -> (i32, i32) {
    %c0_i32 = arith.constant 0 : i32
    %c0_i32_0 = arith.constant 0 : i32
    return %arg0, %c0_i32 : i32, i32
  }
}

module attributes {stable_mosaic.version = 11 : i64} {
  func.func @_ln_matmul_kernel(%arg0: i32, %arg1: memref<8x32xf32, #tpu.memory_space<vmem>>, %arg2: memref<1x32xf32, #tpu.memory_space<vmem>>, %arg3: memref<1x32xf32, #tpu.memory_space<vmem>>, %arg4: memref<32x128xbf16, #tpu.memory_space<vmem>>, %arg5: memref<1x128xf32, #tpu.memory_space<vmem>>, %arg6: memref<8x128xf32, #tpu.memory_space<vmem>>) attributes {dimension_semantics = [#tpu.dimension_semantics<parallel>], iteration_bounds = array<i64: 1>, scalar_prefetch = 0 : i64, scratch_operands = 0 : i64, tpu.core_type = #tpu.core_type<tc>, window_params = [{transform_indices = @transform_0, window_bounds = array<i64: 8, 32>}, {pipeline_mode = #tpu.pipeline_mode<synchronous>, transform_indices = @transform_1, window_bounds = array<i64: 1, 32>}, {pipeline_mode = #tpu.pipeline_mode<synchronous>, transform_indices = @transform_2, window_bounds = array<i64: 1, 32>}, {pipeline_mode = #tpu.pipeline_mode<synchronous>, transform_indices = @transform_3, window_bounds = array<i64: 32, 128>}, {pipeline_mode = #tpu.pipeline_mode<synchronous>, transform_indices = @transform_4, window_bounds = array<i64: 1, 128>}, {transform_indices = @transform_5, window_bounds = array<i64: 8, 128>}]} {
    %c0 = arith.constant 0 : index
    %c0_0 = arith.constant 0 : index
    %0 = vector.load %arg1[%c0, %c0_0] : memref<8x32xf32, #tpu.memory_space<vmem>>, vector<8x32xf32>
    %cst = arith.constant dense<0.000000e+00> : vector<8xf32>
    %1 = vector.multi_reduction <add>, %0, %cst [1] : vector<8x32xf32> to vector<8xf32>
    %2 = vector.shape_cast %1 : vector<8xf32> to vector<8x1xf32>
    %cst_1 = arith.constant 3.200000e+01 : f32
    %3 = vector.broadcast %cst_1 : f32 to vector<8x1xf32>
    %4 = arith.divf %2, %3 : vector<8x1xf32>
    %5 = vector.broadcast %4 : vector<8x1xf32> to vector<8x32xf32>
    %6 = arith.subf %0, %5 : vector<8x32xf32>
    %7 = arith.mulf %6, %6 : vector<8x32xf32>
    %cst_2 = arith.constant dense<0.000000e+00> : vector<8xf32>
    %8 = vector.multi_reduction <add>, %7, %cst_2 [1] : vector<8x32xf32> to vector<8xf32>
    %9 = vector.shape_cast %8 : vector<8xf32> to vector<8x1xf32>
    %cst_3 = arith.constant 3.200000e+01 : f32
    %10 = vector.broadcast %cst_3 : f32 to vector<8x1xf32>
    %11 = arith.divf %9, %10 : vector<8x1xf32>
    %cst_4 = arith.constant 9.99999974E-6 : f32
    %12 = vector.broadcast %cst_4 : f32 to vector<8x1xf32>
    %13 = arith.addf %11, %12 : vector<8x1xf32>
    %14 = math.rsqrt %13 : vector<8x1xf32>
    %15 = vector.broadcast %14 : vector<8x1xf32> to vector<8x32xf32>
    %16 = arith.mulf %6, %15 : vector<8x32xf32>
    %c0_5 = arith.constant 0 : index
    %c0_6 = arith.constant 0 : index
    %17 = vector.load %arg2[%c0_5, %c0_6] : memref<1x32xf32, #tpu.memory_space<vmem>>, vector<1x32xf32>
    %18 = vector.broadcast %17 : vector<1x32xf32> to vector<8x32xf32>
    %19 = arith.mulf %16, %18 : vector<8x32xf32>
    %c0_7 = arith.constant 0 : index
    %c0_8 = arith.constant 0 : index
    %20 = vector.load %arg3[%c0_7, %c0_8] : memref<1x32xf32, #tpu.memory_space<vmem>>, vector<1x32xf32>
    %21 = vector.broadcast %20 : vector<1x32xf32> to vector<8x32xf32>
    %22 = arith.addf %19, %21 : vector<8x32xf32>
    %23 = arith.truncf %22 : vector<8x32xf32> to vector<8x32xbf16>
    %c0_9 = arith.constant 0 : index
    %c0_10 = arith.constant 0 : index
    %24 = vector.load %arg4[%c0_9, %c0_10] : memref<32x128xbf16, #tpu.memory_space<vmem>>, vector<32x128xbf16>
    %cst_11 = arith.constant dense<0.000000e+00> : vector<8x128xf32>
    %25 = tpu.matmul %23, %24, %cst_11 {dimension_numbers = #tpu.dot_dimension_numbers<[1], [0], [0], [1], [0, 0, 1, 1], [], []>} : vector<8x32xbf16>, vector<32x128xbf16>, vector<8x128xf32> -> vector<8x128xf32>
    %c0_12 = arith.constant 0 : index
    %c0_13 = arith.constant 0 : index
    %26 = vector.load %arg5[%c0_12, %c0_13] : memref<1x128xf32, #tpu.memory_space<vmem>>, vector<1x128xf32>
    %27 = vector.broadcast %26 : vector<1x128xf32> to vector<8x128xf32>
    %28 = arith.addf %25, %27 : vector<8x128xf32>
    %c0_14 = arith.constant 0 : index
    %c0_15 = arith.constant 0 : index
    %29 = vector.load %arg6[%c0_14, %c0_15] : memref<8x128xf32, #tpu.memory_space<vmem>>, vector<8x128xf32>
    tpu.vector_store %arg6[%c0_14, %c0_15], %28 {strides = array<i32>} : memref<8x128xf32, #tpu.memory_space<vmem>>, vector<8x128xf32>,
    return
  }
  func.func @transform_0(%arg0: i32) -> (i32, i32) {
    %c0_i32 = arith.constant 0 : i32
    %c0_i32_0 = arith.constant 0 : i32
    return %arg0, %c0_i32 : i32, i32
  }
  func.func @transform_1(%arg0: i32) -> (i32, i32) {
    %c0_i32 = arith.constant 0 : i32
    %c0_i32_0 = arith.constant 0 : i32
    %c0_i32_1 = arith.constant 0 : i32
    return %c0_i32, %c0_i32_0 : i32, i32
  }
  func.func @transform_2(%arg0: i32) -> (i32, i32) {
    %c0_i32 = arith.constant 0 : i32
    %c0_i32_0 = arith.constant 0 : i32
    %c0_i32_1 = arith.constant 0 : i32
    return %c0_i32, %c0_i32_0 : i32, i32
  }
  func.func @transform_3(%arg0: i32) -> (i32, i32) {
    %c0_i32 = arith.constant 0 : i32
    %c0_i32_0 = arith.constant 0 : i32
    %c0_i32_1 = arith.constant 0 : i32
    return %c0_i32, %c0_i32_0 : i32, i32
  }
  func.func @transform_4(%arg0: i32) -> (i32, i32) {
    %c0_i32 = arith.constant 0 : i32
    %c0_i32_0 = arith.constant 0 : i32
    %c0_i32_1 = arith.constant 0 : i32
    return %c0_i32, %c0_i32_0 : i32, i32
  }
  func.func @transform_5(%arg0: i32) -> (i32, i32) {
    %c0_i32 = arith.constant 0 : i32
    %c0_i32_0 = arith.constant 0 : i32
    return %arg0, %c0_i32 : i32, i32
  }
}

</mosaic_0001>

<bundles_post_ra>
// kernel: tpu_custom_call.1
= control target key start
LH: loop header
LB: loop body
LE: loop exit
PB: predicated region body
PF: predicated region fallthrough
CT: control target
= control target key end

     0   :  { %6 = vsyncpa [#allocation3], 0  ;;  %s124_s0 = inlined_call_operand.hbm [shape: f32[8,128], index: 0, kind: input, shape index: {}]   ;;  %s125_s1 = inlined_call_operand.hbm [shape: f32[8,128], index: 1, kind: output, shape index: {}]  }
   0x1   :  { %7 = vsyncpa [#allocation4], 0  ;;  %s88_s6 = smov [#allocation2]   ;;  %s40_s10 = scalar_lea.hbm %s124_s0, 128 }
   0x2   :  { %s14_s7 = sshll.u32 %s88_s6, 4  ;;  %p41_p0 = scmp.ne.s32.totalorder %s124_s0, %s40_s10  ;;  %s15_s7 = int_to_ptr.vmem [resolvable:$true] %s14_s7 }
   0x3   :  { %p44_p1 = scmp.lt.u32.totalorder %s40_s10, %s124_s0 }
   0x5   :  { %p46_p2 = pnand %p44_p1, %p41_p0 }
   0x7   :  { %49 = shalt.err (!%p46_p2)
}
   0x8   :  { %s50_s15 = scalar_lea.vmem %s15_s7, 128  ;;  %p55_p4 = scmp.lt.s32.totalorder %s15_s7, %s15_s7 }
   0x9   :  { %p51_p3 = scmp.ne.s32.totalorder %s15_s7, %s50_s15  ;;  %p56_p5 = scmp.lt.s32.totalorder %s50_s15, %s50_s15 }
   0xb   :  { %p57_p6 = por %p56_p5, %p55_p4 }
   0xd   :  { %p58_p7 = pnand %p57_p6, %p51_p3 }
   0xf   :  { %61 = shalt.err (!%p58_p7)
}
  0x10   :  { %17 = dma.hbm_to_vmem [thread:$0]  %s124_s0, 128, %s15_s7, [#allocation3]  }
  0x11   :  { %84 = dma.done.wait [#allocation3], 128  }
  0x12   :  { %85 = vsyncadd [#allocation3], 4294967168  ;;  %s89_s18 = smov [#allocation5]   ;;  %v21_v0 = vld [vmem:[#allocation2] sm:$0xff] }
  0x13   :  { %s29_s19 = sshll.u32 %s89_s18, 4  ;;  %22 = vst [vmem:[#allocation5] sm:$0xff] %v21_v0  ;;  %s30_s19 = int_to_ptr.vmem [resolvable:$true] %s29_s19 }
  0x14   :  { %s62_s20 = scalar_lea.vmem %s30_s19, 128  ;;  %p67_p9 = scmp.lt.s32.totalorder %s30_s19, %s30_s19 }
  0x15   :  { %p63_p8 = scmp.ne.s32.totalorder %s30_s19, %s62_s20  ;;  %p68_p10 = scmp.lt.s32.totalorder %s62_s20, %s62_s20 }
  0x17   :  { %p69_p11 = por %p68_p10, %p67_p9 }
  0x19   :  { %p70_p12 = pnand %p69_p11, %p63_p8 }
  0x1b   :  { %73 = shalt.err (!%p70_p12)
}
  0x1c   :  { %s74_s23 = scalar_lea.hbm %s125_s1, 128 }
  0x1d   :  { %p75_p13 = scmp.ne.s32.totalorder %s125_s1, %s74_s23  ;;  %p78_p0 = scmp.lt.u32.totalorder %s74_s23, %s125_s1 }
  0x1f   :  { %p80_p1 = pnand %p78_p0, %p75_p13 }
  0x21   :  { %83 = shalt.err (!%p80_p1)
}
  0x22   :  { %32 = dma.vmem_to_hbm [thread:$0]  %s30_s19, 128, %s125_s1, [#allocation4]  }
  0x23   :  { %86 = dma.done.wait [#allocation4], 128  }
  0x24   :  { %87 = vsyncadd [#allocation4], 4294967168 }
  0x25   :  { %36 = vsyncpa [#allocation3], 1 }
  0x26   :  { %37 = vsyncpa [#allocation4], 1 }

// kernel: vit_forward.8
= control target key start
LH: loop header
LB: loop body
LE: loop exit
PB: predicated region body
PF: predicated region fallthrough
CT: control target
= control target key end

     0   :  { %vm60_vm0 = vcmask 523264   ;;  %vm116_vm1 = vcmask 261120   ;;  %s213_s1 = inlined_call_operand.vmem [shape: bf16[64,32], index: 1, kind: input, shape index: {}]   ;;  %s214_s0 = inlined_call_operand.vmem [shape: f32[32,64], index: 0, kind: input, shape index: {}]   ;;  %s215_s2 = inlined_call_operand.vmem [shape: f32[1,32], index: 2, kind: input, shape index: {}]   ;;  %s216_s3 = inlined_call_operand.vmem [shape: f32[32,32], index: 3, kind: output, shape index: {}]  }
   0x1   :  { %v150_v0 = vld [vmem:[%s213_s1] sm:$0xff]   ;;  %v151_v1 = vld [vmem:[%s213_s1 + $0x8] sm:$0xff]   ;;  %v152_v2 = vld [vmem:[%s213_s1 + $0x10] sm:$0xff]  }
   0x2   :  { %138 = vmatprep.subr.bf16.mxu0 %v150_v0  ;;  %v15_v3 = vld [vmem:[%s214_s0] sm:$0xff]  ;;  %v16_v4 = vld [vmem:[%s214_s0 + $0x8] sm:$0xff]  ;;  %v153_v6 = vld [vmem:[%s213_s1 + $0x18] sm:$0xff]  }
   0x3   :  { %139 = vmatpush3.bf16.msra.mxu0 %v150_v0  ;;  %v19_v5 = vpack.c.bf16 %v16_v4, %v15_v3  ;;  %v17_v7 = vld [vmem:[%s214_s0 + $0x10] sm:$0xff]  ;;  %v18_v8 = vld [vmem:[%s214_s0 + $0x18] sm:$0xff]  ;;  %v125_v10 = vld [vmem:[%s215_s2] ss:$0 sm:$0xff] }
   0x4   :  { %140 = vmatprep.subr.bf16.mxu0 %v151_v1  ;;  %v20_v9 = vpack.c.bf16 %v18_v8, %v17_v7 }
   0x5   :  { %146 = vmatprep.mubr.msk.bf16.mxu0 %vm60_vm0, %v19_v5 }
   0x7   :  { %141 = vmatpush3.bf16.msra.mxu0 %v151_v1 }
   0x8   :  { %142 = vmatprep.subr.bf16.mxu0 %v152_v2 }
   0xb   :  { %143 = vmatpush3.bf16.msra.mxu0 %v152_v2 }
   0xc   :  { %144 = vmatprep.subr.bf16.mxu0 %v153_v6 }
   0xf   :  { %145 = vmatpush3.bf16.msra.mxu0 %v153_v6 }
  0x12   :  { %147 = vmatmul.mubr.msk.bf16.vlgmr.msra.gmra.mrb[0].mxu0 %vm60_vm0, %v20_v9 }
  0xe5   :  { %v148_v11 = vpop.f32.mrb[0].mxu0 }
  0xe6   :  { %v110_v12 = vadd.f32 %v148_v11, %v125_v10  ;;  %v101_v13 = vpop.f32.mrb[1].mxu0 }
  0xe7   :  { %v102_v14 = vadd.f32 %v125_v10, %v101_v13  ;;  %v149_v15 = vpop.f32.mrb[2].mxu0 }
  0xe8   :  { %119 = vst.msk [vmem:[%s216_s3 + $0x10] sm:$0xff] %vm116_vm1, %v110_v12  ;;  %v113_v16 = vadd.f32 %v149_v15, %v125_v10  ;;  %v104_v17 = vpop.f32.mrb[3].mxu0 }
  0xe9   :  { %117 = vst.msk [vmem:[%s216_s3] sm:$0xff] %vm116_vm1, %v102_v14  ;;  %v105_v18 = vadd.f32 %v125_v10, %v104_v17 }
  0xea   :  { %120 = vst.msk [vmem:[%s216_s3 + $0x18] sm:$0xff] %vm116_vm1, %v113_v16 }
  0xeb   :  { %118 = vst.msk [vmem:[%s216_s3 + $0x8] sm:$0xff] %vm116_vm1, %v105_v18 }

// kernel: vit_forward.9
= control target key start
LH: loop header
LB: loop body
LE: loop exit
PB: predicated region body
PF: predicated region fallthrough
CT: control target
= control target key end

     0   :  { %vm29_vm0 = vcmask 261120   ;;  %vm301_vm1 = vcmask 781312   ;;  %s540_s0 = inlined_call_operand.vmem [shape: f32[64,32], index: 0, kind: input, shape index: {}]   ;;  %s541_s3 = inlined_call_operand.vmem [shape: bf16[32,96], index: 3, kind: input, shape index: {}]   ;;  %s542_s1 = inlined_call_operand.vmem [shape: f32[1,32], index: 1, kind: input, shape index: {}]   ;;  %s543_s2 = inlined_call_operand.vmem [shape: f32[1,32], index: 2, kind: input, shape index: {}]   ;;  %s544_s4 = inlined_call_operand.vmem [shape: f32[1,96], index: 4, kind: input, shape index: {}]   ;;  %s545_s5 = inlined_call_operand.vmem [shape: bf16[64,96], index: 5, kind: output, shape index: {}]  }
   0x1   :  { %v21_v0 = vld [vmem:[%s540_s0] sm:$0xff]  ;;  %v22_v2 = vld [vmem:[%s540_s0 + $0x8] sm:$0xff]  ;;  %v23_v8 = vld [vmem:[%s540_s0 + $0x10] sm:$0xff] }
   0x2   :  { %v25_v1 = vld [vmem:[%s540_s0 + $0x20] sm:$0xff]  ;;  %v30_v3 = vsel %vm29_vm0, %v21_v0, 0.0  ;;  %v26_v5 = vld [vmem:[%s540_s0 + $0x28] sm:$0xff]  ;;  %v33_v6 = vsel %vm29_vm0, %v22_v2, 0.0  ;;  %v24_v9 = vld [vmem:[%s540_s0 + $0x18] sm:$0xff]  ;;  %v36_v10 = vsel %vm29_vm0, %v23_v8, 0.0 }
   0x3   :  { %v42_v4 = vsel %vm29_vm0, %v25_v1, 0.0  ;;  %31 = vadd.xlane.f32.xlu0 %v30_v3  ;;  %v45_v7 = vsel %vm29_vm0, %v26_v5, 0.0  ;;  %v39_v11 = vsel %vm29_vm0, %v24_v9, 0.0  ;;  %v27_v12 = vld [vmem:[%s540_s0 + $0x30] sm:$0xff]  ;;  %v28_v13 = vld [vmem:[%s540_s0 + $0x38] sm:$0xff]  ;;  %v361_v56 = vld [vmem:[%s541_s3] sm:$0xff]  }
   0x4   :  { %43 = vadd.xlane.f32.xlu1 %v42_v4  ;;  %v48_v14 = vsel %vm29_vm0, %v27_v12, 0.0  ;;  %v51_v15 = vsel %vm29_vm0, %v28_v13, 0.0  ;;  %345 = vmatprep.subr.bf16.mxu0 %v361_v56  ;;  %v362_v57 = vld [vmem:[%s541_s3 + $0x8] sm:$0xff]  }
   0x5   :  { %357 = vmatprep.subr.bf16.mxu1 %v361_v56  ;;  %346 = vmatpush3.bf16.msra.mxu0 %v361_v56 }
   0x6   :  { %359 = vmatpush3.bf16.msra.mxu1 %v361_v56  ;;  %347 = vmatprep.subr.bf16.mxu0 %v362_v57 }
   0x7   :  { %34 = vadd.xlane.f32.xlu0 %v33_v6  ;;  %358 = vmatprep.subr.bf16.mxu1 %v362_v57 }
   0x8   :  { %46 = vadd.xlane.f32.xlu1 %v45_v7 }
   0x9   :  { %348 = vmatpush3.bf16.msra.mxu0 %v362_v57 }
   0xa   :  { %360 = vmatpush3.bf16.msra.mxu1 %v362_v57 }
   0xb   :  { %37 = vadd.xlane.f32.xlu0 %v36_v10 }
   0xc   :  { %40 = vadd.xlane.f32.xlu1 %v39_v11 }
   0xf   :  { %49 = vadd.xlane.f32.xlu0 %v48_v14 }
  0x10   :  { %52 = vadd.xlane.f32.xlu1 %v51_v15 }
  0x90   :  { %v32_v16 = vpop.xlane.xlu0 %31 }
  0x91   :  { %v44_v17 = vpop.xlane.xlu1 %43  ;;  %v55_v18 = vmul.f32 0.03125, %v32_v16 }
  0x92   :  { %v59_v19 = vmul.f32 0.03125, %v44_v17 }
  0x93   :  { %v441_v20 = vsub.f32 %v21_v0, %v55_v18 }
  0x94   :  { %v443_v21 = vsub.f32 %v25_v1, %v59_v19  ;;  %v35_v22 = vpop.xlane.xlu0 %34  ;;  %v314_v19 = vld [vmem:[%s542_s1] ss:$0 sm:$0xff] }
  0x95   :  { %v47_v23 = vpop.xlane.xlu1 %46  ;;  %v56_v24 = vmul.f32 0.03125, %v35_v22  ;;  %v71_v26 = vmul.f32 %v441_v20, %v441_v20 }
  0x96   :  { %v60_v25 = vmul.f32 0.03125, %v47_v23  ;;  %v75_v27 = vmul.f32 %v443_v21, %v443_v21 }
  0x97   :  { %v449_v28 = vsub.f32 %v22_v2, %v56_v24  ;;  %v79_v30 = vsel %vm29_vm0, %v71_v26, 0.0 }
  0x98   :  { %v451_v29 = vsub.f32 %v26_v5, %v60_v25  ;;  %80 = vadd.xlane.f32.xlu0 %v79_v30  ;;  %v38_v31 = vpop.xlane.xlu0 %37  ;;  %v91_v33 = vsel %vm29_vm0, %v75_v27, 0.0  ;;  %v315_v27 = vld [vmem:[%s543_s2] ss:$0 sm:$0xff] }
  0x99   :  { %v41_v32 = vpop.xlane.xlu1 %40  ;;  %v57_v34 = vmul.f32 0.03125, %v38_v31  ;;  %v72_v36 = vmul.f32 %v449_v28, %v449_v28 }
  0x9a   :  { %v58_v35 = vmul.f32 0.03125, %v41_v32  ;;  %v76_v37 = vmul.f32 %v451_v29, %v451_v29 }
  0x9b   :  { %v459_v38 = vsub.f32 %v23_v8, %v57_v34  ;;  %v82_v40 = vsel %vm29_vm0, %v72_v36, 0.0 }
  0x9c   :  { %v461_v39 = vsub.f32 %v24_v9, %v58_v35  ;;  %92 = vadd.xlane.f32.xlu0 %v91_v33  ;;  %83 = vadd.xlane.f32.xlu1 %v82_v40  ;;  %v50_v41 = vpop.xlane.xlu0 %49  ;;  %v94_v43 = vsel %vm29_vm0, %v76_v37, 0.0 }
  0x9d   :  { %v53_v42 = vpop.xlane.xlu1 %52  ;;  %v61_v44 = vmul.f32 0.03125, %v50_v41  ;;  %v73_v46 = vmul.f32 %v459_v38, %v459_v38 }
  0x9e   :  { %v62_v45 = vmul.f32 0.03125, %v53_v42  ;;  %v74_v47 = vmul.f32 %v461_v39, %v461_v39 }
  0x9f   :  { %v469_v48 = vsub.f32 %v27_v12, %v61_v44  ;;  %v85_v50 = vsel %vm29_vm0, %v73_v46, 0.0 }
  0xa0   :  { %v471_v49 = vsub.f32 %v28_v13, %v62_v45  ;;  %95 = vadd.xlane.f32.xlu1 %v94_v43  ;;  %86 = vadd.xlane.f32.xlu0 %v85_v50  ;;  %v88_v51 = vsel %vm29_vm0, %v74_v47, 0.0 }
  0xa1   :  { %v77_v52 = vmul.f32 %v469_v48, %v469_v48 }
  0xa2   :  { %v78_v53 = vmul.f32 %v471_v49, %v471_v49 }
  0xa3   :  { %v97_v54 = vsel %vm29_vm0, %v77_v52, 0.0 }
  0xa4   :  { %89 = vadd.xlane.f32.xlu1 %v88_v51  ;;  %98 = vadd.xlane.f32.xlu0 %v97_v54  ;;  %v100_v55 = vsel %vm29_vm0, %v78_v53, 0.0 }
  0xa8   :  { %101 = vadd.xlane.f32.xlu1 %v100_v55 }
 0x125   :  { %v81_v58 = vpop.xlane.xlu0 %80 }
 0x126   :  { %v103_v59 = vmul.f32 0.03125, %v81_v58 }
 0x128   :  { %v111_v60 = vadd.f32 1e-05, %v103_v59 }
 0x129   :  { %v84_v61 = vpop.xlane.xlu1 %83  ;;  %v93_v62 = vpop.xlane.xlu0 %92 }
 0x12a   :  { %363 = vrsqrt.f32 %v111_v60  ;;  %v104_v63 = vmul.f32 0.03125, %v84_v61  ;;  %v107_v0 = vmul.f32 0.03125, %v93_v62 }
 0x12c   :  { %v112_v1 = vadd.f32 1e-05, %v104_v63  ;;  %v115_v2 = vadd.f32 1e-05, %v107_v0 }
 0x12d   :  { %v96_v3 = vpop.xlane.xlu1 %95  ;;  %v87_v4 = vpop.xlane.xlu0 %86 }
 0x12e   :  { %365 = vrsqrt.f32 %v112_v1  ;;  %v108_v5 = vmul.f32 0.03125, %v96_v3  ;;  %v105_v6 = vmul.f32 0.03125, %v87_v4 }
 0x12f   :  { %367 = vrsqrt.f32 %v115_v2 }
 0x130   :  { %v116_v7 = vadd.f32 1e-05, %v108_v5  ;;  %v113_v8 = vadd.f32 1e-05, %v105_v6 }
 0x131   :  { %v90_v9 = vpop.xlane.xlu1 %89  ;;  %v99_v10 = vpop.xlane.xlu0 %98 }
 0x132   :  { %369 = vrsqrt.f32 %v116_v7  ;;  %v106_v11 = vmul.f32 0.03125, %v90_v9  ;;  %v109_v12 = vmul.f32 0.03125, %v99_v10 }
 0x133   :  { %371 = vrsqrt.f32 %v113_v8 }
 0x134   :  { %v364_v13 = vpop.eup %363  ;;  %v114_v14 = vadd.f32 1e-05, %v106_v11  ;;  %v117_v15 = vadd.f32 1e-05, %v109_v12 }
 0x135   :  { %v102_v16 = vpop.xlane.xlu1 %101  ;;  %v127_v17 = vmul.f32 %v364_v13, %v441_v20 }
 0x136   :  { %373 = vrsqrt.f32 %v114_v14  ;;  %v110_v18 = vmul.f32 0.03125, %v102_v16 }
 0x137   :  { %375 = vrsqrt.f32 %v117_v15  ;;  %v142_v26 = vmul.f32 %v314_v19, %v127_v17 }
 0x138   :  { %v366_v22 = vpop.eup %365  ;;  %v118_v23 = vadd.f32 1e-05, %v110_v18 }
 0x139   :  { %v368_v24 = vpop.eup %367  ;;  %v128_v25 = vmul.f32 %v366_v22, %v449_v28  ;;  %v157_v33 = vadd.f32 %v315_v27, %v142_v26 }
 0x13a   :  { %377 = vrsqrt.f32 %v118_v23  ;;  %v131_v20 = vmul.f32 %v368_v24, %v443_v21 }
 0x13b   :  { %v143_v30 = vmul.f32 %v314_v19, %v128_v25 }
 0x13c   :  { %v370_v31 = vpop.eup %369  ;;  %v146_v36 = vmul.f32 %v314_v19, %v131_v20 }
 0x13d   :  { %v372_v32 = vpop.eup %371  ;;  %v158_v34 = vadd.f32 %v315_v27, %v143_v30  ;;  %v132_v35 = vmul.f32 %v370_v31, %v451_v29 }
 0x13e   :  { %v129_v37 = vmul.f32 %v372_v32, %v459_v38  ;;  %v161_v44 = vadd.f32 %v315_v27, %v146_v36 }
 0x13f   :  { %v165_v40 = vpack.c.bf16 %v158_v34, %v157_v33  ;;  %v147_v28 = vmul.f32 %v314_v19, %v132_v35 }
 0x140   :  { %v374_v41 = vpop.eup %373  ;;  %v144_v45 = vmul.f32 %v314_v19, %v129_v37 }
 0x141   :  { %v376_v42 = vpop.eup %375  ;;  %v130_v43 = vmul.f32 %v374_v41, %v461_v39  ;;  %349 = vmatprep.mubr.msk.bf16.mxu0 %vm29_vm0, %v165_v40  ;;  %v162_v21 = vadd.f32 %v315_v27, %v147_v28 }
 0x142   :  { %v133_v46 = vmul.f32 %v376_v42, %v469_v48  ;;  %v159_v38 = vadd.f32 %v315_v27, %v144_v45  ;;  %v316_v48 = vld [vmem:[%s544_s4] ss:$0 sm:$0xff] }
 0x143   :  { %v167_v47 = vpack.c.bf16 %v162_v21, %v161_v44  ;;  %v145_v50 = vmul.f32 %v314_v19, %v130_v43 }
 0x144   :  { %v378_v51 = vpop.eup %377  ;;  %v148_v53 = vmul.f32 %v314_v19, %v133_v46 }
 0x145   :  { %v134_v29 = vmul.f32 %v378_v51, %v471_v49  ;;  %353 = vmatprep.mubr.msk.bf16.mxu1 %vm29_vm0, %v167_v47  ;;  %v160_v52 = vadd.f32 %v315_v27, %v145_v50 }
 0x146   :  { %v163_v39 = vadd.f32 %v315_v27, %v148_v53 }
 0x147   :  { %v166_v54 = vpack.c.bf16 %v160_v52, %v159_v38  ;;  %v149_v55 = vmul.f32 %v314_v19, %v134_v29 }
 0x149   :  { %350 = vmatmul.mubr.msk.bf16.vlgmr.msra.gmra.mrb[0].mxu0 %vm29_vm0, %v166_v54  ;;  %v164_v56 = vadd.f32 %v315_v27, %v149_v55 }
 0x14b   :  { %v168_v57 = vpack.c.bf16 %v164_v56, %v163_v39 }
 0x14d   :  { %354 = vmatmul.mubr.msk.bf16.vlgmr.msra.gmra.mrb[0].mxu1 %vm29_vm0, %v168_v57 }
 0x21c   :  { %v351_v58 = vpop.f32.mrb[0].mxu0 }
 0x21d   :  { %v247_v49 = vadd.f32 %v351_v58, %v316_v48  ;;  %v238_v59 = vpop.f32.mrb[1].mxu0 }
 0x21e   :  { %v239_v60 = vadd.f32 %v316_v48, %v238_v59  ;;  %v352_v61 = vpop.f32.mrb[2].mxu0 }
 0x21f   :  { %v333_v62 = vpack.c.bf16 %v247_v49, %v247_v49  ;;  %v250_v63 = vadd.f32 %v352_v61, %v316_v48  ;;  %v241_v0 = vpop.f32.mrb[3].mxu0 }
 0x220   :  { %v331_v1 = vpack.c.bf16 %v239_v60, %v239_v60  ;;  %v242_v2 = vadd.f32 %v316_v48, %v241_v0  ;;  %v355_v3 = vpop.f32.mrb[0].mxu1 }
 0x221   :  { %304 = vst.msk [vmem:[%s545_s5 + $0x8] sm:$0xf] %vm301_vm1, %v333_v62  ;;  %v334_v4 = vpack.c.bf16 %v250_v63, %v250_v63  ;;  %v263_v5 = vadd.f32 %v355_v3, %v316_v48  ;;  %v254_v6 = vpop.f32.mrb[1].mxu1 }
 0x222   :  { %302 = vst.msk [vmem:[%s545_s5] sm:$0xf] %vm301_vm1, %v331_v1  ;;  %v332_v7 = vpack.c.bf16 %v242_v2, %v242_v2  ;;  %v255_v8 = vadd.f32 %v316_v48, %v254_v6  ;;  %v356_v9 = vpop.f32.mrb[2].mxu1 }
 0x223   :  { %305 = vst.msk [vmem:[%s545_s5 + $0xc] sm:$0xf] %vm301_vm1, %v334_v4  ;;  %v337_v10 = vpack.c.bf16 %v263_v5, %v263_v5  ;;  %v266_v11 = vadd.f32 %v356_v9, %v316_v48  ;;  %v257_v12 = vpop.f32.mrb[3].mxu1 }
 0x224   :  { %303 = vst.msk [vmem:[%s545_s5 + $0x4] sm:$0xf] %vm301_vm1, %v332_v7  ;;  %v335_v13 = vpack.c.bf16 %v255_v8, %v255_v8  ;;  %v258_v14 = vadd.f32 %v316_v48, %v257_v12 }
 0x225   :  { %308 = vst.msk [vmem:[%s545_s5 + $0x18] sm:$0xf] %vm301_vm1, %v337_v10  ;;  %v338_v15 = vpack.c.bf16 %v266_v11, %v266_v11 }
 0x226   :  { %306 = vst.msk [vmem:[%s545_s5 + $0x10] sm:$0xf] %vm301_vm1, %v335_v13  ;;  %v336_v16 = vpack.c.bf16 %v258_v14, %v258_v14 }
 0x227   :  { %309 = vst.msk [vmem:[%s545_s5 + $0x1c] sm:$0xf] %vm301_vm1, %v338_v15 }
 0x228   :  { %307 = vst.msk [vmem:[%s545_s5 + $0x14] sm:$0xf] %vm301_vm1, %v336_v16 }

// kernel: vit_forward.10
= control target key start
LH: loop header
LB: loop body
LE: loop exit
PB: predicated region body
PF: predicated region fallthrough
CT: control target
= control target key end

     0   :  { %s1612_s15 = smov 0   ;;  %s1801_s0 = inlined_call_operand.vmem [shape: bf16[2,32,96], index: 0, kind: input, shape index: {}]   ;;  %s1802_s1 = inlined_call_operand.vmem [shape: f32[2,32,32], index: 1, kind: input, shape index: {}]   ;;  %s1803_s2 = inlined_call_operand.vmem [shape: bf16[32,32], index: 2, kind: input, shape index: {}]   ;;  %s1804_s3 = inlined_call_operand.vmem [shape: f32[1,32], index: 3, kind: input, shape index: {}]   ;;  %s1805_s4 = inlined_call_operand.vmem [shape: f32[2,32,32], index: 4, kind: output, shape index: {}]  }
   0x1 LB: > { %s1282_s16 = sadd.s32 4294967295, %s1573_s15   ;;  %p1286_p0 = scmp.ge.s32.totalorder %s1573_s15, 1  ;;  %s1573_s15 = sphi %s1612_s15, %s14_s15  }
   0x2   : > { %p172_p1 = scmp.lt.s32.totalorder %s1573_s15, 3 }
   0x4   : > { %p173_p2 = pnand %p1286_p0, %p172_p1 }
   0x5   : > { %p203_p3 = scmp.lt.s32.totalorder (!%p173_p2), %s1282_s16, 1  ;;  %vm241_vm0 = vcmask (!%p173_p2), 64512   ;;  %s1575_s21 = smov (!%p173_p2), 96   ;;  %v223_v6 = vlaneseq (!%p173_p2)  ;;  %v1576_v8 = vmov (!%p173_p2), -1e+30   ;;  %vm303_vm2 = vcmask (!%p173_p2), 261120  }
   0x6   : > { %176 = sbr.rel (%p173_p2) target bundleno = 2476 (0x9ac), region = 36  ;;  %s1577_s22 = smov (!%p173_p2), 64   ;;  %vm599_vm3 = vcmask (!%p173_p2), 1043456  }
   0x7   : > { %v224_v7 = vand.u32 (!%p173_p2), 127, %v223_v6  ;;  %s1578_s23 = smov (!%p173_p2), 88   ;;  %s1579_s24 = smov (!%p173_p2), 120  }
   0x8   : > { %s1580_s25 = smov (!%p173_p2), 56   ;;  %s1581_s26 = smov (!%p173_p2), 80  }
   0x9   : > { %vm225_vm1 = vcmp.lt.s32.totalorder (!%p173_p2), %v224_v7, 17  ;;  %s1582_s27 = smov (!%p173_p2), 112   ;;  %s1583_s28 = smov (!%p173_p2), 72  }
   0xa   : > { %v1640_v9 = vsel (!%p173_p2), %vm225_vm1, 0.0, %v1576_v8  ;;  %s1584_s29 = smov (!%p173_p2), 104   ;;  %s1585_s8 = smov (!%p173_p2), 48  }
   0xb   : > { %s1586_s9 = smov (!%p173_p2), 40  }
   0xd   : > { %s1807_s16 = smov (!%p203_p3, %s1282_s16), 1 }
   0xe   : > { %s1322_s17 = sshll.u32 %s1807_s16, 4  ;;  %s1323_s14 = sshll.u32 %s1807_s16, 5 }
   0xf   : > { %s207_s20 = scalar_lea.vmem %s1801_s0, %s1322_s17  ;;  %s212_s19 = scalar_lea.vmem %s1802_s1, %s1323_s14 }
  0x10   : > { %v1626_v0 = vld [vmem:[%s207_s20] sm:$0xff]   ;;  %v1629_v1 = vld [vmem:[%s207_s20 + $0x8] sm:$0xff]  }
  0x11   : > { %237 = vrot.lane.b32.xlu0 %v1626_v0, %s1575_s21  ;;  %1373 = vmatprep.mubr.msk.bf16.mxu0 %vm241_vm0, %v1626_v0 }
  0x15   : > { %239 = vrot.lane.b32.xlu0 %v1629_v1, %s1575_s21 }
  0x83   : > { %v238_v2 = vpop.permute.xlu0 %237 }
  0x84   : > { %1469 = vmatprep.subr.msk.bf16.mxu0 %vm241_vm0, %v238_v2  ;;  %v249_v3 = vsel %vm241_vm0, %v238_v2, 0 }
  0x85   : > { %1370 = vmatpush3.bf16.xpose.msra.mxu0 %v249_v3 }
  0x87   : > { %v240_v4 = vpop.permute.xlu0 %239 }
  0x88   : > { %1470 = vmatprep.subr.msk.bf16.mxu0 %vm241_vm0, %v240_v4  ;;  %v252_v5 = vsel %vm241_vm0, %v240_v4, 0 }
  0x8d   : > { %1372 = vmatpush3.bf16.xpose.msra.mxu0 %v252_v5 }
  0x94   : > { %1374 = vmatmul.mubr.msk.bf16.vlgmr.msra.gmra.mrb[0].mxu0 %vm241_vm0, %v1629_v1 }
 0x167   : > { %v1375_v10 = vpop.f32.mrb[0].mxu0 }
 0x168   : > { %v297_v11 = vadd.f32 %v1375_v10, %v1640_v9  ;;  %v288_v12 = vpop.f32.mrb[1].mxu0 }
 0x169   : > { %v289_v13 = vadd.f32 %v288_v12, %v1640_v9  ;;  %v1376_v14 = vpop.f32.mrb[2].mxu0 }
 0x16a   : > { %v291_v15 = vpop.f32.mrb[3].mxu0  ;;  %v310_v16 = vsel %vm303_vm2, %v297_v11, -inf  ;;  %v300_v19 = vadd.f32 %v1376_v14, %v1640_v9 }
 0x16b   : > { %v292_v17 = vadd.f32 %v291_v15, %v1640_v9  ;;  %311 = vmax.xlane.f32.xlu0 %v310_v16  ;;  %v304_v18 = vsel %vm303_vm2, %v289_v13, -inf }
 0x16c   : > { %305 = vmax.xlane.f32.xlu1 %v304_v18  ;;  %v313_v21 = vsel %vm303_vm2, %v300_v19, -inf }
 0x16d   : > { %v307_v20 = vsel %vm303_vm2, %v292_v17, -inf }
 0x170   : > { %308 = vmax.xlane.f32.xlu1 %v307_v20 }
 0x174   : > { %314 = vmax.xlane.f32.xlu1 %v313_v21 }
 0x181   : > { %352 = vrot.lane.b32.xlu0 %v1629_v1, %s1577_s22 }
 0x185   : > { %350 = vrot.lane.b32.xlu1 %v1626_v0, %s1577_s22 }
 0x1f8   : > { %v312_v22 = vpop.xlane.xlu0 %311 }
 0x1f9   : > { %v318_v23 = vsub.f32 %v297_v11, %v312_v22  ;;  %v306_v24 = vpop.xlane.xlu1 %305 }
 0x1fa   : > { %v316_v25 = vsub.f32 %v289_v13, %v306_v24 }
 0x1fb   : > { %v324_v26 = vmul.f32 1.442695, %v318_v23 }
 0x1fc   : > { %v320_v27 = vmul.f32 1.442695, %v316_v25  ;;  %v353_v43 = vpop.permute.xlu0 %352 }
 0x1fd   : > { %1503 = vpow2.f32 %v324_v26  ;;  %v309_v28 = vpop.xlane.xlu1 %308 }
 0x1fe   : > { %1505 = vpow2.f32 %v320_v27  ;;  %v317_v29 = vsub.f32 %v292_v17, %v309_v28 }
 0x200   : > { %v322_v32 = vmul.f32 1.442695, %v317_v29 }
 0x201   : > { %v315_v30 = vpop.xlane.xlu1 %314 }
 0x202   : > { %v319_v31 = vsub.f32 %v300_v19, %v315_v30 }
 0x204   : > { %v326_v33 = vmul.f32 1.442695, %v319_v31 }
 0x205   : > { %v351_v34 = vpop.permute.xlu1 %350 }
 0x206   : > { %1507 = vpow2.f32 %v326_v33  ;;  %1377 = vmatprep.subr.bf16.mxu1 %v351_v34 }
 0x207   : > { %v1504_v35 = vpop.eup %1503  ;;  %1378 = vmatpush3.bf16.msra.mxu1 %v351_v34  ;;  %1509 = vpow2.f32 %v322_v32 }
 0x208   : > { %v334_v36 = vsel %vm303_vm2, %v1504_v35, 0.0  ;;  %v1506_v37 = vpop.eup %1505  ;;  %1379 = vmatprep.subr.bf16.mxu1 %v353_v43 }
 0x209   : > { %335 = vadd.xlane.f32.xlu1 %v334_v36  ;;  %v328_v38 = vsel %vm303_vm2, %v1506_v37, 0.0 }
 0x20b   : > { %1380 = vmatpush3.bf16.msra.mxu1 %v353_v43 }
 0x20d   : > { %329 = vadd.xlane.f32.xlu1 %v328_v38 }
 0x210   : > { %v1508_v39 = vpop.eup %1507 }
 0x211   : > { %v337_v40 = vsel %vm303_vm2, %v1508_v39, 0.0  ;;  %v1510_v41 = vpop.eup %1509 }
 0x212   : > { %338 = vadd.xlane.f32.xlu1 %v337_v40  ;;  %v331_v42 = vsel %vm303_vm2, %v1510_v41, 0.0 }
 0x216   : > { %332 = vadd.xlane.f32.xlu1 %v331_v42 }
 0x227   : > { %418 = vrot.lane.b32.xlu1 %v1626_v0, %s1578_s23 }
 0x22b   : > { %420 = vrot.lane.b32.xlu1 %v1629_v1, %s1578_s23 }
 0x22f   : > { %414 = vrot.lane.b32.xlu1 %v1626_v0, %s1579_s24 }
 0x233   : > { %416 = vrot.lane.b32.xlu1 %v1629_v1, %s1579_s24  ;;  %s217_s24 = scalar_lea.vmem %s1805_s4, %s1323_s14 }
 0x296   : > { %v336_v44 = vpop.xlane.xlu1 %335 }
 0x29a   : > { %v330_v45 = vpop.xlane.xlu1 %329 }
 0x29f   : > { %v339_v46 = vpop.xlane.xlu1 %338 }
 0x2a0   : > { %1511 = vrcp.f32 %v339_v46 }
 0x2a1   : > { %1513 = vrcp.f32 %v330_v45 }
 0x2a2   : > { %1515 = vrcp.f32 %v336_v44 }
 0x2a3   : > { %v333_v47 = vpop.xlane.xlu1 %332 }
 0x2a4   : > { %1517 = vrcp.f32 %v333_v47 }
 0x2a7   : > { %v419_v48 = vpop.permute.xlu1 %418 }
 0x2a8   : > { %1471 = vmatprep.subr.msk.bf16.mxu1 %vm241_vm0, %v419_v48  ;;  %v429_v59 = vsel %vm241_vm0, %v419_v48, 0 }
 0x2aa   : > { %v1512_v49 = vpop.eup %1511 }
 0x2ab   : > { %v1514_v50 = vpop.eup %1513  ;;  %v421_v51 = vpop.permute.xlu1 %420  ;;  %v347_v54 = vmul.f32 %v1512_v49, %v1508_v39 }
 0x2ac   : > { %v1516_v52 = vpop.eup %1515  ;;  %v344_v55 = vmul.f32 %v1514_v50, %v1506_v37  ;;  %v432_v62 = vsel %vm241_vm0, %v421_v51, 0 }
 0x2ad   : > { %v346_v57 = vmul.f32 %v1516_v52, %v1504_v35 }
 0x2ae   : > { %v1518_v53 = vpop.eup %1517 }
 0x2af   : > { %v345_v56 = vmul.f32 %v1518_v53, %v1510_v41  ;;  %v349_v60 = vpack.c.bf16 %v347_v54, %v346_v57  ;;  %v415_v61 = vpop.permute.xlu1 %414 }
 0x2b1   : > { %v348_v58 = vpack.c.bf16 %v345_v56, %v344_v55 }
 0x2b3   : > { %1381 = vmatprep.mubr.msk.bf16.mxu1 %vm303_vm2, %v348_v58  ;;  %v417_v63 = vpop.permute.xlu1 %416 }
 0x2b4   : > { %1382 = vmatmul.mubr.msk.bf16.vlgmr.msra.gmra.mrb[0].mxu1 %vm303_vm2, %v349_v60 }
 0x2b5   : > { %1386 = vmatpush3.bf16.xpose.msra.mxu1 %v429_v59  ;;  %1389 = vmatprep.mubr.msk.bf16.mxu1 %vm241_vm0, %v415_v61 }
 0x2b6   : > { %1472 = vmatprep.subr.msk.bf16.mxu1 %vm241_vm0, %v421_v51 }
 0x2bd   : > { %1388 = vmatpush3.bf16.xpose.msra.mxu1 %v432_v62 }
 0x2c4   : > { %1390 = vmatmul.mubr.msk.bf16.vlgmr.msra.gmra.mrb[4].mxu1 %vm241_vm0, %v417_v63  ;;  %v592_v63 = vld [vmem:[%s1803_s2 + $0x4] sm:$0xf] }
 0x2c5   : > { %1473 = vmatprep.subr.msk.bf16.mxu0 %vm599_vm3, %v592_v63 }
 0x387   : > { %v1668_v2 = vpop.f32.mrb[0].mxu1 }
 0x388   : > { %v1670_v3 = vpop.f32.mrb[1].mxu1 }
 0x389   : > { %v1672_v4 = vpop.f32.mrb[2].mxu1 }
 0x38a   : > { %v412_v5 = vpack.c.bf16 %v1672_v4, %v1668_v2  ;;  %v1676_v6 = vpop.f32.mrb[3].mxu1 }
 0x38b   : > { %v411_v7 = vpack.c.bf16 %v1676_v6, %v1670_v3 }
 0x397   : > { %v1391_v8 = vpop.f32.mrb[4].mxu1 }
 0x398   : > { %v468_v10 = vpop.f32.mrb[5].mxu1  ;;  %v477_v14 = vadd.f32 %v1391_v8, %v1640_v9  ;;  %v601_v8 = vsel %vm599_vm3, %v592_v63, 0 }
 0x399   : > { %v469_v11 = vadd.f32 %v468_v10, %v1640_v9  ;;  %v1392_v12 = vpop.f32.mrb[6].mxu1  ;;  %1402 = vmatpush3.bf16.msra.mxu0 %v601_v8 }
 0x39a   : > { %v471_v13 = vpop.f32.mrb[7].mxu1  ;;  %v480_v18 = vadd.f32 %v1392_v12, %v1640_v9  ;;  %v489_v19 = vsel %vm303_vm2, %v477_v14, -inf }
 0x39b   : > { %v472_v15 = vadd.f32 %v471_v13, %v1640_v9  ;;  %v483_v16 = vsel %vm303_vm2, %v469_v11, -inf  ;;  %v413_v13 = vld [vmem:[%s1803_s2] sm:$0xf] }
 0x39c   : > { %484 = vmax.xlane.f32.xlu0 %v483_v16  ;;  %v492_v20 = vsel %vm303_vm2, %v480_v18, -inf  ;;  %1474 = vmatprep.subr.msk.bf16.mxu0 %vm599_vm3, %v413_v13 }
 0x39d   : > { %v486_v17 = vsel %vm303_vm2, %v472_v15, -inf }
 0x39e   : > { %487 = vmax.xlane.f32.xlu1 %v486_v17 }
 0x3a0   : > { %490 = vmax.xlane.f32.xlu0 %v489_v19 }
 0x3a4   : > { %493 = vmax.xlane.f32.xlu0 %v492_v20 }
 0x3af   : > { %529 = vrot.lane.b32.xlu1 %v1626_v0, %s1580_s25 }
 0x429   : > { %v485_v21 = vpop.xlane.xlu0 %484 }
 0x42a   : > { %v495_v23 = vsub.f32 %v469_v11, %v485_v21 }
 0x42b   : > { %v488_v22 = vpop.xlane.xlu1 %487 }
 0x42c   : > { %v499_v27 = vmul.f32 1.442695, %v495_v23  ;;  %v496_v28 = vsub.f32 %v472_v15, %v488_v22  ;;  %v659_v23 = vsel %vm599_vm3, %v413_v13, 0 }
 0x42d   : > { %v491_v24 = vpop.xlane.xlu0 %490 }
 0x42e   : > { %v497_v25 = vsub.f32 %v477_v14, %v491_v24  ;;  %v501_v32 = vmul.f32 1.442695, %v496_v28 }
 0x42f   : > { %v530_v26 = vpop.permute.xlu1 %529 }
 0x430   : > { %v503_v29 = vmul.f32 1.442695, %v497_v25  ;;  %1393 = vmatprep.subr.bf16.mxu1 %v530_v26 }
 0x431   : > { %v494_v30 = vpop.xlane.xlu0 %493  ;;  %1394 = vmatpush3.bf16.msra.mxu1 %v530_v26 }
 0x432   : > { %1519 = vpow2.f32 %v503_v29  ;;  %v498_v31 = vsub.f32 %v480_v18, %v494_v30 }
 0x433   : > { %1521 = vpow2.f32 %v499_v27 }
 0x434   : > { %v505_v33 = vmul.f32 1.442695, %v498_v31 }
 0x436   : > { %1523 = vpow2.f32 %v505_v33 }
 0x437   : > { %1525 = vpow2.f32 %v501_v32 }
 0x43c   : > { %v1520_v34 = vpop.eup %1519 }
 0x43d   : > { %v513_v35 = vsel %vm303_vm2, %v1520_v34, 0.0  ;;  %v1522_v36 = vpop.eup %1521 }
 0x43e   : > { %514 = vadd.xlane.f32.xlu1 %v513_v35  ;;  %v507_v38 = vsel %vm303_vm2, %v1522_v36, 0.0 }
 0x440   : > { %v1524_v37 = vpop.eup %1523 }
 0x441   : > { %v516_v39 = vsel %vm303_vm2, %v1524_v37, 0.0  ;;  %v1526_v40 = vpop.eup %1525 }
 0x442   : > { %508 = vadd.xlane.f32.xlu1 %v507_v38  ;;  %517 = vadd.xlane.f32.xlu0 %v516_v39  ;;  %v510_v41 = vsel %vm303_vm2, %v1526_v40, 0.0 }
 0x446   : > { %511 = vadd.xlane.f32.xlu0 %v510_v41 }
 0x453   : > { %714 = vrot.lane.b32.xlu1 %v1626_v0, %s1581_s26 }
 0x457   : > { %716 = vrot.lane.b32.xlu1 %v1629_v1, %s1581_s26 }
 0x45b   : > { %712 = vrot.lane.b32.xlu1 %v1629_v1, %s1582_s27 }
 0x45c   : > { %531 = vrot.lane.b32.xlu0 %v1629_v1, %s1580_s25 }
 0x45f   : > { %957 = vrot.lane.b32.xlu1 %v1629_v1, %s1583_s28 }
 0x460   : > { %710 = vrot.lane.b32.xlu0 %v1626_v0, %s1582_s27 }
 0x463   : > { %953 = vrot.lane.b32.xlu1 %v1629_v1, %s1584_s29 }
 0x464   : > { %955 = vrot.lane.b32.xlu0 %v1626_v0, %s1583_s28 }
 0x468   : > { %951 = vrot.lane.b32.xlu0 %v1626_v0, %s1584_s29 }
 0x4cb   : > { %v515_v42 = vpop.xlane.xlu1 %514 }
 0x4cf   : > { %v509_v43 = vpop.xlane.xlu1 %508  ;;  %v518_v44 = vpop.xlane.xlu0 %517 }
 0x4d0   : > { %1527 = vrcp.f32 %v518_v44 }
 0x4d1   : > { %1529 = vrcp.f32 %v509_v43 }
 0x4d2   : > { %1531 = vrcp.f32 %v515_v42 }
 0x4d3   : > { %v512_v45 = vpop.xlane.xlu0 %511  ;;  %v715_v47 = vpop.permute.xlu1 %714 }
 0x4d4   : > { %1533 = vrcp.f32 %v512_v45  ;;  %v725_v57 = vsel %vm241_vm0, %v715_v47, 0 }
 0x4d7   : > { %v532_v46 = vpop.permute.xlu0 %531  ;;  %v717_v60 = vpop.permute.xlu1 %716 }
 0x4d8   : > { %1395 = vmatprep.subr.bf16.mxu1 %v532_v46  ;;  %v728_v61 = vsel %vm241_vm0, %v717_v60, 0 }
 0x4d9   : > { %1396 = vmatpush3.bf16.msra.mxu1 %v532_v46 }
 0x4da   : > { %1475 = vmatprep.subr.msk.bf16.mxu1 %vm241_vm0, %v715_v47  ;;  %v1528_v48 = vpop.eup %1527 }
 0x4db   : > { %v1530_v49 = vpop.eup %1529  ;;  %v526_v52 = vmul.f32 %v1528_v48, %v1524_v37  ;;  %v711_v59 = vpop.permute.xlu0 %710 }
 0x4dc   : > { %v1532_v50 = vpop.eup %1531  ;;  %v523_v53 = vmul.f32 %v1530_v49, %v1522_v36  ;;  %v713_v62 = vpop.permute.xlu1 %712 }
 0x4dd   : > { %v525_v55 = vmul.f32 %v1532_v50, %v1520_v34 }
 0x4de   : > { %v1534_v51 = vpop.eup %1533 }
 0x4df   : > { %v524_v54 = vmul.f32 %v1534_v51, %v1526_v40  ;;  %v528_v58 = vpack.c.bf16 %v526_v52, %v525_v55  ;;  %v956_v10 = vpop.permute.xlu0 %955 }
 0x4e0   : > { %v966_v11 = vsel %vm241_vm0, %v956_v10, 0  ;;  %v958_v12 = vpop.permute.xlu1 %957 }
 0x4e1   : > { %v527_v56 = vpack.c.bf16 %v524_v54, %v523_v53  ;;  %v969_v14 = vsel %vm241_vm0, %v958_v12, 0 }
 0x4e3   : > { %1397 = vmatprep.mubr.msk.bf16.mxu1 %vm303_vm2, %v527_v56  ;;  %v952_v15 = vpop.permute.xlu0 %951 }
 0x4e4   : > { %1398 = vmatmul.mubr.msk.bf16.vlgmr.msra.gmra.mrb[8].mxu1 %vm303_vm2, %v528_v58  ;;  %v954_v16 = vpop.permute.xlu1 %953 }
 0x4e5   : > { %1414 = vmatpush3.bf16.xpose.msra.mxu1 %v725_v57  ;;  %1417 = vmatprep.mubr.msk.bf16.mxu1 %vm241_vm0, %v711_v59 }
 0x4e6   : > { %1476 = vmatprep.subr.msk.bf16.mxu1 %vm241_vm0, %v717_v60 }
 0x4ed   : > { %1416 = vmatpush3.bf16.xpose.msra.mxu1 %v728_v61 }
 0x4ee   : > { %1478 = vmatprep.subr.msk.bf16.mxu1 %vm241_vm0, %v956_v10 }
 0x4f4   : > { %1418 = vmatmul.mubr.msk.bf16.vlgmr.msra.gmra.mrb[12].mxu1 %vm241_vm0, %v713_v62 }
 0x4f5   : > { %1436 = vmatpush3.bf16.xpose.msra.mxu1 %v966_v11  ;;  %1439 = vmatprep.mubr.msk.bf16.mxu1 %vm241_vm0, %v952_v15 }
 0x4f6   : > { %1479 = vmatprep.subr.msk.bf16.mxu1 %vm241_vm0, %v958_v12 }
 0x4fd   : > { %1438 = vmatpush3.bf16.xpose.msra.mxu1 %v969_v14 }
 0x504   : > { %1440 = vmatmul.mubr.msk.bf16.vlgmr.msra.gmra.mrb[16].mxu1 %vm241_vm0, %v954_v16 }
 0x5b7   : > { %v1399_v17 = vpop.f32.mrb[8].mxu1 }
 0x5b8   : > { %v575_v18 = vpop.f32.mrb[9].mxu1 }
 0x5b9   : > { %v1400_v19 = vpop.f32.mrb[10].mxu1 }
 0x5ba   : > { %v591_v20 = vpack.c.bf16 %v1400_v19, %v1399_v17  ;;  %v578_v21 = vpop.f32.mrb[11].mxu1 }
 0x5bb   : > { %v590_v22 = vpack.c.bf16 %v578_v21, %v575_v18 }
 0x5bd   : > { %1403 = vmatprep.mubr.msk.bf16.mxu0 %vm241_vm0, %v590_v22 }
 0x5be   : > { %1404 = vmatmul.mubr.msk.bf16.vlgmr.msra.gmra.mrb[4].mxu0 %vm241_vm0, %v591_v20 }
 0x5bf   : > { %1409 = vmatprep.mubr.msk.bf16.mxu0 %vm241_vm0, %v411_v7  ;;  %1408 = vmatpush3.bf16.msra.mxu0 %v659_v23 }
 0x5c7   : > { %v1419_v24 = vpop.f32.mrb[12].mxu1 }
 0x5c8   : > { %v764_v25 = vpop.f32.mrb[13].mxu1  ;;  %v773_v29 = vadd.f32 %v1419_v24, %v1640_v9 }
 0x5c9   : > { %v765_v26 = vadd.f32 %v764_v25, %v1640_v9  ;;  %v1420_v27 = vpop.f32.mrb[14].mxu1 }
 0x5ca   : > { %v767_v28 = vpop.f32.mrb[15].mxu1  ;;  %1410 = vmatmul.mubr.msk.bf16.vlgmr.msra.gmra.mrb[4].mxu0 %vm241_vm0, %v412_v5  ;;  %v776_v7 = vadd.f32 %v1420_v27, %v1640_v9  ;;  %v785_v31 = vsel %vm303_vm2, %v773_v29, -inf }
 0x5cb   : > { %v768_v30 = vadd.f32 %v767_v28, %v1640_v9  ;;  %v779_v3 = vsel %vm303_vm2, %v765_v26, -inf }
 0x5cc   : > { %780 = vmax.xlane.f32.xlu0 %v779_v3  ;;  %v788_v32 = vsel %vm303_vm2, %v776_v7, -inf }
 0x5cd   : > { %v782_v6 = vsel %vm303_vm2, %v768_v30, -inf }
 0x5ce   : > { %783 = vmax.xlane.f32.xlu1 %v782_v6 }
 0x5d0   : > { %786 = vmax.xlane.f32.xlu0 %v785_v31 }
 0x5d4   : > { %789 = vmax.xlane.f32.xlu0 %v788_v32 }
 0x5d7   : > { %v1441_v2 = vpop.f32.mrb[16].mxu1 }
 0x5d8   : > { %v1005_v4 = vpop.f32.mrb[17].mxu1  ;;  %v1014_v55 = vadd.f32 %v1441_v2, %v1640_v9 }
 0x5d9   : > { %v1442_v5 = vpop.f32.mrb[18].mxu1  ;;  %v1006_v54 = vadd.f32 %v1005_v4, %v1640_v9 }
 0x5da   : > { %v1008_v33 = vpop.f32.mrb[19].mxu1  ;;  %v1017_v58 = vadd.f32 %v1442_v5, %v1640_v9  ;;  %v1026_v59 = vsel %vm303_vm2, %v1014_v55, -inf }
 0x5db   : > { %v1009_v56 = vadd.f32 %v1008_v33, %v1640_v9  ;;  %v1020_v57 = vsel %vm303_vm2, %v1006_v54, -inf }
 0x5dc   : > { %v1029_v61 = vsel %vm303_vm2, %v1017_v58, -inf }
 0x5dd   : > { %v1023_v60 = vsel %vm303_vm2, %v1009_v56, -inf }
 0x659   : > { %v781_v34 = vpop.xlane.xlu0 %780 }
 0x65a   : > { %v791_v35 = vsub.f32 %v765_v26, %v781_v34 }
 0x65b   : > { %v784_v36 = vpop.xlane.xlu1 %783 }
 0x65c   : > { %v795_v39 = vmul.f32 1.442695, %v791_v35  ;;  %v792_v40 = vsub.f32 %v768_v30, %v784_v36  ;;  %v888_v36 = vld [vmem:[%s1803_s2 + $0x8] sm:$0xf] }
 0x65d   : > { %v787_v37 = vpop.xlane.xlu0 %786 }
 0x65e   : > { %v793_v38 = vsub.f32 %v773_v29, %v787_v37  ;;  %v797_v44 = vmul.f32 1.442695, %v792_v40  ;;  %v896_v37 = vsel %vm599_vm3, %v888_v36, 0 }
 0x660   : > { %v799_v41 = vmul.f32 1.442695, %v793_v38 }
 0x661   : > { %v790_v42 = vpop.xlane.xlu0 %789 }
 0x662   : > { %1535 = vpow2.f32 %v799_v41  ;;  %v794_v43 = vsub.f32 %v776_v7, %v790_v42 }
 0x663   : > { %1537 = vpow2.f32 %v795_v39 }
 0x664   : > { %v801_v45 = vmul.f32 1.442695, %v794_v43 }
 0x666   : > { %1539 = vpow2.f32 %v801_v45 }
 0x667   : > { %1541 = vpow2.f32 %v797_v44 }
 0x66c   : > { %v1536_v46 = vpop.eup %1535 }
 0x66d   : > { %v809_v47 = vsel %vm303_vm2, %v1536_v46, 0.0  ;;  %v1538_v48 = vpop.eup %1537 }
 0x66e   : > { %810 = vadd.xlane.f32.xlu1 %v809_v47  ;;  %v803_v50 = vsel %vm303_vm2, %v1538_v48, 0.0 }
 0x670   : > { %v1540_v49 = vpop.eup %1539 }
 0x671   : > { %v812_v51 = vsel %vm303_vm2, %v1540_v49, 0.0  ;;  %v1542_v52 = vpop.eup %1541 }
 0x672   : > { %804 = vadd.xlane.f32.xlu1 %v803_v50  ;;  %813 = vadd.xlane.f32.xlu0 %v812_v51  ;;  %v806_v53 = vsel %vm303_vm2, %v1542_v52, 0.0 }
 0x676   : > { %807 = vadd.xlane.f32.xlu0 %v806_v53 }
 0x683   : > { %825 = vrot.lane.b32.xlu1 %v1626_v0, %s1585_s8 }
 0x68c   : > { %827 = vrot.lane.b32.xlu0 %v1629_v1, %s1585_s8 }
 0x6a7   : > { %1021 = vmax.xlane.f32.xlu1 %v1020_v57 }
 0x6ab   : > { %1027 = vmax.xlane.f32.xlu1 %v1026_v59  ;;  %1024 = vmax.xlane.f32.xlu0 %v1023_v60 }
 0x6af   : > { %1030 = vmax.xlane.f32.xlu0 %v1029_v61 }
 0x6fb   : > { %v811_v62 = vpop.xlane.xlu1 %810 }
 0x6ff   : > { %v805_v63 = vpop.xlane.xlu1 %804  ;;  %v814_v8 = vpop.xlane.xlu0 %813 }
 0x700   : > { %1543 = vrcp.f32 %v814_v8 }
 0x701   : > { %1545 = vrcp.f32 %v805_v63 }
 0x702   : > { %1547 = vrcp.f32 %v811_v62 }
 0x703   : > { %v826_v10 = vpop.permute.xlu1 %825  ;;  %v808_v11 = vpop.xlane.xlu0 %807 }
 0x704   : > { %1549 = vrcp.f32 %v808_v11  ;;  %1421 = vmatprep.subr.bf16.mxu0 %v826_v10  ;;  %v1194_v11 = vld [vmem:[%s212_s19 + $0x10] sm:$0xff] }
 0x705   : > { %1422 = vmatpush3.bf16.msra.mxu0 %v826_v10 }
 0x707   : > { %v828_v9 = vpop.permute.xlu0 %827 }
 0x708   : > { %1423 = vmatprep.subr.bf16.mxu0 %v828_v9 }
 0x709   : > { %1424 = vmatpush3.bf16.msra.mxu0 %v828_v9  ;;  %v1192_v9 = vld [vmem:[%s212_s19] sm:$0xff] }
 0x70a   : > { %v1544_v12 = vpop.eup %1543  ;;  %1477 = vmatprep.subr.msk.bf16.mxu0 %vm599_vm3, %v888_v36 }
 0x70b   : > { %v1546_v13 = vpop.eup %1545  ;;  %v822_v16 = vmul.f32 %v1544_v12, %v1540_v49 }
 0x70c   : > { %v1548_v14 = vpop.eup %1547  ;;  %v819_v17 = vmul.f32 %v1546_v13, %v1538_v48  ;;  %v1319_v13 = vld [vmem:[%s1804_s3] ss:$0 sm:$0xff] }
 0x70d   : > { %v821_v19 = vmul.f32 %v1548_v14, %v1536_v46  ;;  %v1195_v14 = vld [vmem:[%s212_s19 + $0x18] sm:$0xff] }
 0x70e   : > { %v1550_v15 = vpop.eup %1549 }
 0x70f   : > { %v820_v18 = vmul.f32 %v1550_v15, %v1542_v52  ;;  %v824_v21 = vpack.c.bf16 %v822_v16, %v821_v19 }
 0x711   : > { %v823_v20 = vpack.c.bf16 %v820_v18, %v819_v17  ;;  %v1193_v17 = vld [vmem:[%s212_s19 + $0x8] sm:$0xff] }
 0x713   : > { %1425 = vmatprep.mubr.msk.bf16.mxu0 %vm303_vm2, %v823_v20 }
 0x714   : > { %1426 = vmatmul.mubr.msk.bf16.vlgmr.msra.gmra.mrb[8].mxu0 %vm303_vm2, %v824_v21 }
 0x715   : > { %1430 = vmatpush3.bf16.msra.mxu0 %v896_v37 }
 0x734   : > { %v1022_v22 = vpop.xlane.xlu1 %1021 }
 0x735   : > { %v1032_v23 = vsub.f32 %v1006_v54, %v1022_v22 }
 0x737   : > { %v1036_v27 = vmul.f32 1.442695, %v1032_v23 }
 0x738   : > { %v1028_v24 = vpop.xlane.xlu1 %1027  ;;  %v1025_v25 = vpop.xlane.xlu0 %1024 }
 0x739   : > { %v1034_v26 = vsub.f32 %v1014_v55, %v1028_v24  ;;  %v1033_v29 = vsub.f32 %v1009_v56, %v1025_v25  ;;  %v1129_v56 = vld [vmem:[%s1803_s2 + $0xc] sm:$0xf] }
 0x73a   : > { %v1137_v59 = vsel %vm599_vm3, %v1129_v56, 0 }
 0x73b   : > { %v1040_v28 = vmul.f32 1.442695, %v1034_v26  ;;  %v1038_v6 = vmul.f32 1.442695, %v1033_v29 }
 0x73c   : > { %v1031_v30 = vpop.xlane.xlu0 %1030 }
 0x73d   : > { %1551 = vpow2.f32 %v1040_v28  ;;  %v1035_v3 = vsub.f32 %v1017_v58, %v1031_v30 }
 0x73e   : > { %1553 = vpow2.f32 %v1036_v27 }
 0x73f   : > { %v1042_v7 = vmul.f32 1.442695, %v1035_v3 }
 0x741   : > { %1555 = vpow2.f32 %v1042_v7 }
 0x742   : > { %1557 = vpow2.f32 %v1038_v6 }
 0x747   : > { %v1552_v31 = vpop.eup %1551 }
 0x748   : > { %v1050_v32 = vsel %vm303_vm2, %v1552_v31, 0.0  ;;  %v1554_v2 = vpop.eup %1553 }
 0x749   : > { %1051 = vadd.xlane.f32.xlu1 %v1050_v32  ;;  %v1044_v5 = vsel %vm303_vm2, %v1554_v2, 0.0 }
 0x74b   : > { %v1556_v4 = vpop.eup %1555 }
 0x74c   : > { %v1053_v33 = vsel %vm303_vm2, %v1556_v4, 0.0  ;;  %v1558_v34 = vpop.eup %1557 }
 0x74d   : > { %1045 = vadd.xlane.f32.xlu1 %v1044_v5  ;;  %1054 = vadd.xlane.f32.xlu0 %v1053_v33  ;;  %v1047_v35 = vsel %vm303_vm2, %v1558_v34, 0.0 }
 0x751   : > { %1048 = vadd.xlane.f32.xlu0 %v1047_v35 }
 0x75e   : > { %1066 = vrot.lane.b32.xlu1 %v1626_v0, %s1586_s9 }
 0x767   : > { %1068 = vrot.lane.b32.xlu0 %v1629_v1, %s1586_s9 }
 0x7d6   : > { %v1052_v38 = vpop.xlane.xlu1 %1051 }
 0x7da   : > { %v1046_v39 = vpop.xlane.xlu1 %1045  ;;  %v1055_v40 = vpop.xlane.xlu0 %1054 }
 0x7db   : > { %1559 = vrcp.f32 %v1046_v39 }
 0x7de   : > { %v1049_v41 = vpop.xlane.xlu0 %1048  ;;  %v1067_v42 = vpop.permute.xlu1 %1066 }
 0x7df   : > { %1561 = vrcp.f32 %v1049_v41  ;;  %1443 = vmatprep.subr.bf16.mxu0 %v1067_v42 }
 0x7e0   : > { %1563 = vrcp.f32 %v1055_v40 }
 0x7e1   : > { %1565 = vrcp.f32 %v1052_v38 }
 0x7e2   : > { %v1069_v53 = vpop.permute.xlu0 %1068 }
 0x7e5   : > { %v1560_v0 = vpop.eup %1559 }
 0x7e6   : > { %v1060_v48 = vmul.f32 %v1560_v0, %v1554_v2 }
 0x7e7   : > { %v1427_v1 = vpop.f32.mrb[8].mxu0 }
 0x7e8   : > { %v871_v43 = vpop.f32.mrb[9].mxu0 }
 0x7e9   : > { %v1562_v44 = vpop.eup %1561  ;;  %v1428_v45 = vpop.f32.mrb[10].mxu0 }
 0x7ea   : > { %v887_v46 = vpack.c.bf16 %v1428_v45, %v1427_v1  ;;  %v874_v47 = vpop.f32.mrb[11].mxu0  ;;  %v1061_v49 = vmul.f32 %v1562_v44, %v1558_v34  ;;  %v1564_v52 = vpop.eup %1563 }
 0x7eb   : > { %v886_v50 = vpack.c.bf16 %v874_v47, %v871_v43  ;;  %v1566_v54 = vpop.eup %1565  ;;  %v1063_v55 = vmul.f32 %v1564_v52, %v1556_v4 }
 0x7ec   : > { %v1064_v51 = vpack.c.bf16 %v1061_v49, %v1060_v48  ;;  %v1062_v57 = vmul.f32 %v1566_v54, %v1552_v31 }
 0x7ed   : > { %1431 = vmatprep.mubr.msk.bf16.mxu0 %vm241_vm0, %v886_v50 }
 0x7ee   : > { %1432 = vmatmul.mubr.msk.bf16.vlgmr.msra.gmra.mrb[4].mxu0 %vm241_vm0, %v887_v46  ;;  %v1065_v58 = vpack.c.bf16 %v1063_v55, %v1062_v57 }
 0x7ef   : > { %1444 = vmatpush3.bf16.msra.mxu0 %v1067_v42  ;;  %1447 = vmatprep.mubr.msk.bf16.mxu0 %vm303_vm2, %v1064_v51 }
 0x7f0   : > { %1445 = vmatprep.subr.bf16.mxu0 %v1069_v53 }
 0x7f3   : > { %1446 = vmatpush3.bf16.msra.mxu0 %v1069_v53 }
 0x7f4   : > { %1480 = vmatprep.subr.msk.bf16.mxu0 %vm599_vm3, %v1129_v56 }
 0x7f6   : > { %1448 = vmatmul.mubr.msk.bf16.vlgmr.msra.gmra.mrb[12].mxu0 %vm303_vm2, %v1065_v58 }
 0x7f7   : > { %1452 = vmatpush3.bf16.msra.mxu0 %v1137_v59 }
 0x8c9   : > { %v1449_v60 = vpop.f32.mrb[12].mxu0 }
 0x8ca   : > { %v1112_v61 = vpop.f32.mrb[13].mxu0 }
 0x8cb   : > { %v1450_v62 = vpop.f32.mrb[14].mxu0 }
 0x8cc   : > { %v1128_v63 = vpack.c.bf16 %v1450_v62, %v1449_v60  ;;  %v1115_v8 = vpop.f32.mrb[15].mxu0 }
 0x8cd   : > { %v1127_v10 = vpack.c.bf16 %v1115_v8, %v1112_v61 }
 0x8cf   : > { %1453 = vmatprep.mubr.msk.bf16.mxu0 %vm241_vm0, %v1127_v10 }
 0x8d0   : > { %1454 = vmatmul.mubr.msk.bf16.vlgmr.msra.gmra.mrb[4].mxu0 %vm241_vm0, %v1128_v63 }
 0x9a3   : > { %v1455_v12 = vpop.f32.mrb[4].mxu0 }
 0x9a4   : > { %v1198_v15 = vadd.f32 %v1455_v12, %v1194_v11  ;;  %v1173_v16 = vpop.f32.mrb[5].mxu0 }
 0x9a5   : > { %v1196_v18 = vadd.f32 %v1192_v9, %v1173_v16  ;;  %v1456_v19 = vpop.f32.mrb[6].mxu0 }
 0x9a6   : > { %v1209_v20 = vadd.f32 %v1319_v13, %v1198_v15  ;;  %v1199_v21 = vadd.f32 %v1456_v19, %v1195_v14  ;;  %v1176_v22 = vpop.f32.mrb[7].mxu0 }
 0x9a7   : > { %v1207_v23 = vadd.f32 %v1319_v13, %v1196_v18  ;;  %v1197_v24 = vadd.f32 %v1193_v17, %v1176_v22 }
 0x9a8   : > { %1213 = vst.msk [vmem:[%s217_s24 + $0x10] sm:$0xff] %vm303_vm2, %v1209_v20  ;;  %v1210_v25 = vadd.f32 %v1319_v13, %v1199_v21 }
 0x9a9   : > { %1211 = vst.msk [vmem:[%s217_s24] sm:$0xff] %vm303_vm2, %v1207_v23  ;;  %v1208_v26 = vadd.f32 %v1319_v13, %v1197_v24 }
 0x9aa   : > { %1214 = vst.msk [vmem:[%s217_s24 + $0x18] sm:$0xff] %vm303_vm2, %v1210_v25 }
 0x9ab   : > { %1212 = vst.msk [vmem:[%s217_s24 + $0x8] sm:$0xff] %vm303_vm2, %v1208_v26 }
 0x9ac PF: > { %s14_s15 = sadd.s32 1, %s1573_s15  }
 0x9ad   : > { %p11_p4 = scmp.ge.s32.totalorder %s14_s15, 4  }
 0x9af   :  { %13 = sbr.rel (!%p11_p4) target bundleno = 1 (0x1), region = 69 }

// kernel: vit_forward.11
= control target key start
LH: loop header
LB: loop body
LE: loop exit
PB: predicated region body
PF: predicated region fallthrough
CT: control target
= control target key end

     0   :  { %vm35_vm0 = vcmask 261120   ;;  %vm358_vm1 = vcmask 523264   ;;  %s784_s0 = inlined_call_operand.vmem [shape: f32[64,32], index: 0, kind: input, shape index: {}]   ;;  %s785_s3 = inlined_call_operand.vmem [shape: bf16[32,64], index: 3, kind: input, shape index: {}]   ;;  %s786_s1 = inlined_call_operand.vmem [shape: f32[1,32], index: 1, kind: input, shape index: {}]   ;;  %s787_s2 = inlined_call_operand.vmem [shape: f32[1,32], index: 2, kind: input, shape index: {}]   ;;  %s788_s5 = inlined_call_operand.vmem [shape: bf16[64,32], index: 5, kind: input, shape index: {}]   ;;  %s789_s4 = inlined_call_operand.vmem [shape: f32[1,64], index: 4, kind: input, shape index: {}]   ;;  %s790_s6 = inlined_call_operand.vmem [shape: f32[1,32], index: 6, kind: input, shape index: {}]   ;;  %s791_s7 = inlined_call_operand.vmem [shape: f32[64,32], index: 7, kind: output, shape index: {}]  }
   0x1   :  { %v597_v0 = vld [vmem:[%s784_s0] sm:$0xff]  ;;  %v602_v1 = vld [vmem:[%s784_s0 + $0x10] sm:$0xff]  ;;  %v607_v2 = vld [vmem:[%s784_s0 + $0x8] sm:$0xff] }
   0x2   :  { %v36_v3 = vsel %vm35_vm0, %v597_v0, 0.0  ;;  %v42_v4 = vsel %vm35_vm0, %v602_v1, 0.0  ;;  %v616_v5 = vld [vmem:[%s784_s0 + $0x18] sm:$0xff]  ;;  %v39_v6 = vsel %vm35_vm0, %v607_v2, 0.0  ;;  %v625_v8 = vld [vmem:[%s784_s0 + $0x20] sm:$0xff]  ;;  %v630_v9 = vld [vmem:[%s784_s0 + $0x28] sm:$0xff] }
   0x3   :  { %37 = vadd.xlane.f32.xlu0 %v36_v3  ;;  %43 = vadd.xlane.f32.xlu1 %v42_v4  ;;  %v45_v7 = vsel %vm35_vm0, %v616_v5, 0.0  ;;  %v48_v10 = vsel %vm35_vm0, %v625_v8, 0.0  ;;  %v51_v11 = vsel %vm35_vm0, %v630_v9, 0.0  ;;  %v639_v12 = vld [vmem:[%s784_s0 + $0x30] sm:$0xff]  ;;  %v644_v13 = vld [vmem:[%s784_s0 + $0x38] sm:$0xff]  ;;  %v516_v56 = vld [vmem:[%s785_s3] sm:$0xff]  }
   0x4   :  { %v54_v14 = vsel %vm35_vm0, %v639_v12, 0.0  ;;  %v57_v15 = vsel %vm35_vm0, %v644_v13, 0.0  ;;  %488 = vmatprep.subr.bf16.mxu0 %v516_v56  ;;  %v517_v57 = vld [vmem:[%s785_s3 + $0x8] sm:$0xff]  }
   0x5   :  { %489 = vmatpush3.bf16.msra.mxu0 %v516_v56 }
   0x6   :  { %490 = vmatprep.subr.bf16.mxu0 %v517_v57 }
   0x7   :  { %40 = vadd.xlane.f32.xlu0 %v39_v6  ;;  %46 = vadd.xlane.f32.xlu1 %v45_v7 }
   0x9   :  { %491 = vmatpush3.bf16.msra.mxu0 %v517_v57 }
   0xb   :  { %49 = vadd.xlane.f32.xlu0 %v48_v10  ;;  %52 = vadd.xlane.f32.xlu1 %v51_v11 }
   0xf   :  { %55 = vadd.xlane.f32.xlu0 %v54_v14  ;;  %58 = vadd.xlane.f32.xlu1 %v57_v15 }
  0x90   :  { %v38_v16 = vpop.xlane.xlu0 %37  ;;  %v44_v17 = vpop.xlane.xlu1 %43 }
  0x91   :  { %v61_v18 = vmul.f32 0.03125, %v38_v16  ;;  %v63_v19 = vmul.f32 0.03125, %v44_v17 }
  0x93   :  { %v651_v20 = vsub.f32 %v597_v0, %v61_v18  ;;  %v654_v21 = vsub.f32 %v602_v1, %v63_v19 }
  0x94   :  { %v41_v22 = vpop.xlane.xlu0 %40  ;;  %v47_v23 = vpop.xlane.xlu1 %46 }
  0x95   :  { %v62_v24 = vmul.f32 0.03125, %v41_v22  ;;  %v64_v25 = vmul.f32 0.03125, %v47_v23  ;;  %v77_v26 = vmul.f32 %v651_v20, %v651_v20  ;;  %v79_v27 = vmul.f32 %v654_v21, %v654_v21 }
  0x97   :  { %v661_v28 = vsub.f32 %v607_v2, %v62_v24  ;;  %v664_v29 = vsub.f32 %v616_v5, %v64_v25  ;;  %v85_v30 = vsel %vm35_vm0, %v77_v26, 0.0  ;;  %v91_v33 = vsel %vm35_vm0, %v79_v27, 0.0 }
  0x98   :  { %86 = vadd.xlane.f32.xlu0 %v85_v30  ;;  %v50_v31 = vpop.xlane.xlu0 %49  ;;  %v53_v32 = vpop.xlane.xlu1 %52 }
  0x99   :  { %v65_v34 = vmul.f32 0.03125, %v50_v31  ;;  %v66_v35 = vmul.f32 0.03125, %v53_v32  ;;  %v78_v36 = vmul.f32 %v661_v28, %v661_v28  ;;  %v80_v37 = vmul.f32 %v664_v29, %v664_v29  ;;  %v456_v31 = vld [vmem:[%s786_s1] ss:$0 sm:$0xff] }
  0x9b   :  { %v673_v38 = vsub.f32 %v625_v8, %v65_v34  ;;  %v676_v39 = vsub.f32 %v630_v9, %v66_v35  ;;  %v88_v40 = vsel %vm35_vm0, %v78_v36, 0.0  ;;  %v94_v43 = vsel %vm35_vm0, %v80_v37, 0.0 }
  0x9c   :  { %92 = vadd.xlane.f32.xlu0 %v91_v33  ;;  %89 = vadd.xlane.f32.xlu1 %v88_v40  ;;  %v56_v41 = vpop.xlane.xlu0 %55  ;;  %v59_v42 = vpop.xlane.xlu1 %58 }
  0x9d   :  { %v67_v44 = vmul.f32 0.03125, %v56_v41  ;;  %v68_v45 = vmul.f32 0.03125, %v59_v42  ;;  %v81_v46 = vmul.f32 %v673_v38, %v673_v38  ;;  %v82_v47 = vmul.f32 %v676_v39, %v676_v39 }
  0x9f   :  { %v685_v48 = vsub.f32 %v639_v12, %v67_v44  ;;  %v688_v49 = vsub.f32 %v644_v13, %v68_v45  ;;  %v97_v50 = vsel %vm35_vm0, %v81_v46, 0.0  ;;  %v100_v51 = vsel %vm35_vm0, %v82_v47, 0.0 }
  0xa0   :  { %95 = vadd.xlane.f32.xlu1 %v94_v43  ;;  %98 = vadd.xlane.f32.xlu0 %v97_v50 }
  0xa1   :  { %v83_v52 = vmul.f32 %v685_v48, %v685_v48  ;;  %v84_v53 = vmul.f32 %v688_v49, %v688_v49 }
  0xa3   :  { %v103_v54 = vsel %vm35_vm0, %v83_v52, 0.0  ;;  %v106_v55 = vsel %vm35_vm0, %v84_v53, 0.0 }
  0xa4   :  { %101 = vadd.xlane.f32.xlu1 %v100_v51  ;;  %104 = vadd.xlane.f32.xlu0 %v103_v54 }
  0xa8   :  { %107 = vadd.xlane.f32.xlu1 %v106_v55 }
 0x125   :  { %v87_v58 = vpop.xlane.xlu0 %86 }
 0x126   :  { %v109_v59 = vmul.f32 0.03125, %v87_v58 }
 0x128   :  { %v117_v60 = vadd.f32 1e-05, %v109_v59 }
 0x129   :  { %v90_v61 = vpop.xlane.xlu1 %89  ;;  %v93_v62 = vpop.xlane.xlu0 %92 }
 0x12a   :  { %522 = vrsqrt.f32 %v117_v60  ;;  %v110_v63 = vmul.f32 0.03125, %v90_v61  ;;  %v111_v3 = vmul.f32 0.03125, %v93_v62 }
 0x12c   :  { %v118_v4 = vadd.f32 1e-05, %v110_v63  ;;  %v119_v6 = vadd.f32 1e-05, %v111_v3 }
 0x12d   :  { %v96_v7 = vpop.xlane.xlu1 %95  ;;  %v99_v10 = vpop.xlane.xlu0 %98 }
 0x12e   :  { %524 = vrsqrt.f32 %v118_v4  ;;  %v112_v11 = vmul.f32 0.03125, %v96_v7  ;;  %v113_v14 = vmul.f32 0.03125, %v99_v10  ;;  %v521_v7 = vld [vmem:[%s788_s5 + $0x18] sm:$0xff]   ;;  %v458_v10 = vld [vmem:[%s789_s4] ss:$0 sm:$0xff] }
 0x12f   :  { %526 = vrsqrt.f32 %v119_v6  ;;  %v520_v6 = vld [vmem:[%s788_s5 + $0x10] sm:$0xff]  }
 0x130   :  { %v120_v15 = vadd.f32 1e-05, %v112_v11  ;;  %v121_v16 = vadd.f32 1e-05, %v113_v14 }
 0x131   :  { %v102_v17 = vpop.xlane.xlu1 %101  ;;  %v105_v18 = vpop.xlane.xlu0 %104 }
 0x132   :  { %528 = vrsqrt.f32 %v120_v15  ;;  %v114_v19 = vmul.f32 0.03125, %v102_v17  ;;  %v115_v22 = vmul.f32 0.03125, %v105_v18 }
 0x133   :  { %530 = vrsqrt.f32 %v121_v16 }
 0x134   :  { %v523_v23 = vpop.eup %522  ;;  %v122_v24 = vadd.f32 1e-05, %v114_v19  ;;  %v123_v25 = vadd.f32 1e-05, %v115_v22 }
 0x135   :  { %v108_v26 = vpop.xlane.xlu1 %107  ;;  %v133_v27 = vmul.f32 %v523_v23, %v651_v20  ;;  %v457_v20 = vld [vmem:[%s787_s2] ss:$0 sm:$0xff] }
 0x136   :  { %532 = vrsqrt.f32 %v122_v24  ;;  %v116_v30 = vmul.f32 0.03125, %v108_v26 }
 0x137   :  { %534 = vrsqrt.f32 %v123_v25  ;;  %v148_v36 = vmul.f32 %v456_v31, %v133_v27 }
 0x138   :  { %v525_v32 = vpop.eup %524  ;;  %v124_v33 = vadd.f32 1e-05, %v116_v30 }
 0x139   :  { %v527_v34 = vpop.eup %526  ;;  %v134_v35 = vmul.f32 %v525_v32, %v661_v28  ;;  %v163_v44 = vadd.f32 %v457_v20, %v148_v36 }
 0x13a   :  { %v135_v37 = vmul.f32 %v527_v34, %v654_v21  ;;  %536 = vrsqrt.f32 %v124_v33 }
 0x13b   :  { %v149_v40 = vmul.f32 %v456_v31, %v134_v35 }
 0x13c   :  { %v529_v41 = vpop.eup %528  ;;  %v150_v46 = vmul.f32 %v456_v31, %v135_v37 }
 0x13d   :  { %v531_v42 = vpop.eup %530  ;;  %v136_v43 = vmul.f32 %v529_v41, %v664_v29  ;;  %v164_v45 = vadd.f32 %v457_v20, %v149_v40 }
 0x13e   :  { %v137_v47 = vmul.f32 %v531_v42, %v673_v38  ;;  %v165_v53 = vadd.f32 %v457_v20, %v150_v46 }
 0x13f   :  { %v171_v50 = vpack.c.bf16 %v164_v45, %v163_v44  ;;  %v151_v28 = vmul.f32 %v456_v31, %v136_v43 }
 0x140   :  { %v533_v51 = vpop.eup %532  ;;  %v152_v55 = vmul.f32 %v456_v31, %v137_v47 }
 0x141   :  { %v535_v52 = vpop.eup %534  ;;  %v138_v21 = vmul.f32 %v533_v51, %v676_v39  ;;  %492 = vmatprep.mubr.msk.bf16.mxu0 %vm35_vm0, %v171_v50  ;;  %v166_v54 = vadd.f32 %v457_v20, %v151_v28 }
 0x142   :  { %v139_v56 = vmul.f32 %v535_v52, %v685_v48  ;;  %v167_v38 = vadd.f32 %v457_v20, %v152_v55  ;;  %v518_v48 = vld [vmem:[%s788_s5] sm:$0xff]  }
 0x143   :  { %v172_v57 = vpack.c.bf16 %v166_v54, %v165_v53  ;;  %v153_v29 = vmul.f32 %v456_v31, %v138_v21  ;;  %500 = vmatprep.subr.bf16.mxu1 %v518_v48 }
 0x144   :  { %v537_v58 = vpop.eup %536  ;;  %v154_v61 = vmul.f32 %v456_v31, %v139_v56  ;;  %501 = vmatpush3.bf16.msra.mxu1 %v518_v48 }
 0x145   :  { %v140_v59 = vmul.f32 %v537_v58, %v688_v49  ;;  %493 = vmatmul.mubr.msk.bf16.vlgmr.msra.gmra.mrb[0].mxu0 %vm35_vm0, %v172_v57  ;;  %v168_v60 = vadd.f32 %v457_v20, %v153_v29  ;;  %v519_v49 = vld [vmem:[%s788_s5 + $0x8] sm:$0xff]  }
 0x146   :  { %v169_v39 = vadd.f32 %v457_v20, %v154_v61  ;;  %502 = vmatprep.subr.bf16.mxu1 %v519_v49 }
 0x147   :  { %v173_v62 = vpack.c.bf16 %v168_v60, %v167_v38  ;;  %v155_v63 = vmul.f32 %v456_v31, %v140_v59 }
 0x148   :  { %503 = vmatpush3.bf16.msra.mxu1 %v519_v49 }
 0x149   :  { %496 = vmatprep.mubr.msk.bf16.mxu0 %vm35_vm0, %v173_v62  ;;  %v170_v3 = vadd.f32 %v457_v20, %v155_v63  ;;  %504 = vmatprep.subr.bf16.mxu1 %v520_v6 }
 0x14b   :  { %v174_v4 = vpack.c.bf16 %v170_v3, %v169_v39 }
 0x14c   :  { %505 = vmatpush3.bf16.msra.mxu1 %v520_v6 }
 0x14d   :  { %497 = vmatmul.mubr.msk.bf16.gmra.mrb[4].mxu0 %vm35_vm0, %v174_v4  ;;  %506 = vmatprep.subr.bf16.mxu1 %v521_v7 }
 0x150   :  { %507 = vmatpush3.bf16.msra.mxu1 %v521_v7 }
 0x218   :  { %v494_v11 = vpop.f32.mrb[0].mxu0 }
 0x219   :  { %v253_v14 = vadd.f32 %v494_v11, %v458_v10  ;;  %v244_v15 = vpop.f32.mrb[1].mxu0 }
 0x21a   :  { %v245_v16 = vadd.f32 %v458_v10, %v244_v15  ;;  %v495_v17 = vpop.f32.mrb[2].mxu0 }
 0x21b   :  { %v285_v18 = vmul.f32 0.70710677, %v253_v14  ;;  %v256_v19 = vadd.f32 %v495_v17, %v458_v10  ;;  %v247_v22 = vpop.f32.mrb[3].mxu0  ;;  %v277_v50 = vmul.f32 0.5, %v253_v14  ;;  %v465_v17 = vld [vmem:[%s790_s6] ss:$0 sm:$0xff] }
 0x21c   :  { %v283_v23 = vmul.f32 0.70710677, %v245_v16  ;;  %v248_v24 = vadd.f32 %v458_v10, %v247_v22  ;;  %v275_v52 = vmul.f32 0.5, %v245_v16 }
 0x21d   :  { %538 = verf.f32 %v285_v18  ;;  %v286_v25 = vmul.f32 0.70710677, %v256_v19  ;;  %v278_v28 = vmul.f32 0.5, %v256_v19 }
 0x21e   :  { %540 = verf.f32 %v283_v23  ;;  %v284_v26 = vmul.f32 0.70710677, %v248_v24  ;;  %v276_v21 = vmul.f32 0.5, %v248_v24 }
 0x21f   :  { %542 = verf.f32 %v286_v25 }
 0x220   :  { %544 = verf.f32 %v284_v26  ;;  %v498_v27 = vpop.f32.mrb[4].mxu0 }
 0x221   :  { %v269_v30 = vadd.f32 %v498_v27, %v458_v10  ;;  %v260_v31 = vpop.f32.mrb[5].mxu0 }
 0x222   :  { %v261_v32 = vadd.f32 %v458_v10, %v260_v31  ;;  %v499_v33 = vpop.f32.mrb[6].mxu0 }
 0x223   :  { %v289_v34 = vmul.f32 0.70710677, %v269_v30  ;;  %v272_v35 = vadd.f32 %v499_v33, %v458_v10  ;;  %v263_v36 = vpop.f32.mrb[7].mxu0  ;;  %v281_v39 = vmul.f32 0.5, %v269_v30 }
 0x224   :  { %v287_v37 = vmul.f32 0.70710677, %v261_v32  ;;  %v264_v20 = vadd.f32 %v458_v10, %v263_v36  ;;  %v279_v48 = vmul.f32 0.5, %v261_v32 }
 0x225   :  { %546 = verf.f32 %v289_v34  ;;  %v290_v40 = vmul.f32 0.70710677, %v272_v35  ;;  %v282_v3 = vmul.f32 0.5, %v272_v35 }
 0x226   :  { %548 = verf.f32 %v287_v37  ;;  %v288_v41 = vmul.f32 0.70710677, %v264_v20  ;;  %v280_v49 = vmul.f32 0.5, %v264_v20 }
 0x227   :  { %v539_v42 = vpop.eup %538  ;;  %550 = verf.f32 %v290_v40 }
 0x228   :  { %v541_v43 = vpop.eup %540  ;;  %v301_v44 = vadd.f32 1.0, %v539_v42  ;;  %552 = verf.f32 %v288_v41 }
 0x229   :  { %v543_v45 = vpop.eup %542  ;;  %v299_v46 = vadd.f32 1.0, %v541_v43 }
 0x22a   :  { %v545_v47 = vpop.eup %544  ;;  %v302_v51 = vadd.f32 1.0, %v543_v45  ;;  %v309_v54 = vmul.f32 %v301_v44, %v277_v50 }
 0x22b   :  { %v300_v53 = vadd.f32 1.0, %v545_v47  ;;  %v307_v56 = vmul.f32 %v299_v46, %v275_v52 }
 0x22c   :  { %v310_v55 = vmul.f32 %v302_v51, %v278_v28 }
 0x22d   :  { %v308_v57 = vmul.f32 %v300_v53, %v276_v21 }
 0x22e   :  { %v316_v29 = vpack.c.bf16 %v310_v55, %v309_v54 }
 0x22f   :  { %v547_v58 = vpop.eup %546  ;;  %v315_v59 = vpack.c.bf16 %v308_v57, %v307_v56 }
 0x230   :  { %v549_v38 = vpop.eup %548  ;;  %v305_v60 = vadd.f32 1.0, %v547_v58 }
 0x231   :  { %v551_v61 = vpop.eup %550  ;;  %v303_v62 = vadd.f32 1.0, %v549_v38  ;;  %508 = vmatprep.mubr.msk.bf16.mxu1 %vm358_vm1, %v315_v59 }
 0x232   :  { %v553_v63 = vpop.eup %552  ;;  %v306_v4 = vadd.f32 1.0, %v551_v61  ;;  %509 = vmatmul.mubr.msk.bf16.vlgmr.msra.gmra.mrb[0].mxu1 %vm358_vm1, %v316_v29  ;;  %v313_v7 = vmul.f32 %v305_v60, %v281_v39 }
 0x233   :  { %v304_v6 = vadd.f32 1.0, %v553_v63  ;;  %v311_v11 = vmul.f32 %v303_v62, %v279_v48 }
 0x234   :  { %v314_v10 = vmul.f32 %v306_v4, %v282_v3 }
 0x235   :  { %v312_v14 = vmul.f32 %v304_v6, %v280_v49 }
 0x236   :  { %v318_v15 = vpack.c.bf16 %v314_v10, %v313_v7 }
 0x237   :  { %v317_v16 = vpack.c.bf16 %v312_v14, %v311_v11 }
 0x239   :  { %512 = vmatprep.mubr.msk.bf16.mxu1 %vm358_vm1, %v317_v16 }
 0x23a   :  { %513 = vmatmul.mubr.msk.bf16.gmra.mrb[4].mxu1 %vm358_vm1, %v318_v15 }
 0x305   :  { %v510_v18 = vpop.f32.mrb[0].mxu1 }
 0x306   :  { %v414_v19 = vadd.f32 %v510_v18, %v465_v17  ;;  %v405_v22 = vpop.f32.mrb[1].mxu1 }
 0x307   :  { %v406_v23 = vadd.f32 %v465_v17, %v405_v22  ;;  %v511_v24 = vpop.f32.mrb[2].mxu1 }
 0x308   :  { %v438_v25 = vadd.f32 %v414_v19, %v602_v1  ;;  %v417_v26 = vadd.f32 %v511_v24, %v465_v17  ;;  %v408_v27 = vpop.f32.mrb[3].mxu1 }
 0x309   :  { %v436_v30 = vadd.f32 %v406_v23, %v597_v0  ;;  %v409_v31 = vadd.f32 %v465_v17, %v408_v27 }
 0x30a   :  { %446 = vst.msk [vmem:[%s791_s7 + $0x10] sm:$0xff] %vm35_vm0, %v438_v25  ;;  %v439_v32 = vadd.f32 %v417_v26, %v616_v5 }
 0x30b   :  { %444 = vst.msk [vmem:[%s791_s7] sm:$0xff] %vm35_vm0, %v436_v30  ;;  %v437_v33 = vadd.f32 %v409_v31, %v607_v2 }
 0x30c   :  { %447 = vst.msk [vmem:[%s791_s7 + $0x18] sm:$0xff] %vm35_vm0, %v439_v32 }
 0x30d   :  { %445 = vst.msk [vmem:[%s791_s7 + $0x8] sm:$0xff] %vm35_vm0, %v437_v33  ;;  %v514_v0 = vpop.f32.mrb[4].mxu1 }
 0x30e   :  { %v430_v1 = vadd.f32 %v514_v0, %v465_v17  ;;  %v421_v5 = vpop.f32.mrb[5].mxu1 }
 0x30f   :  { %v422_v34 = vadd.f32 %v465_v17, %v421_v5  ;;  %v515_v35 = vpop.f32.mrb[6].mxu1 }
 0x310   :  { %v442_v36 = vadd.f32 %v430_v1, %v639_v12  ;;  %v433_v37 = vadd.f32 %v515_v35, %v465_v17  ;;  %v424_v20 = vpop.f32.mrb[7].mxu1 }
 0x311   :  { %v440_v2 = vadd.f32 %v422_v34, %v625_v8  ;;  %v425_v40 = vadd.f32 %v465_v17, %v424_v20 }
 0x312   :  { %450 = vst.msk [vmem:[%s791_s7 + $0x30] sm:$0xff] %vm35_vm0, %v442_v36  ;;  %v443_v41 = vadd.f32 %v433_v37, %v644_v13 }
 0x313   :  { %448 = vst.msk [vmem:[%s791_s7 + $0x20] sm:$0xff] %vm35_vm0, %v440_v2  ;;  %v441_v42 = vadd.f32 %v425_v40, %v630_v9 }
 0x314   :  { %451 = vst.msk [vmem:[%s791_s7 + $0x38] sm:$0xff] %vm35_vm0, %v443_v41 }
 0x315   :  { %449 = vst.msk [vmem:[%s791_s7 + $0x28] sm:$0xff] %vm35_vm0, %v441_v42 }

// kernel: vit_forward.15
= control target key start
LH: loop header
LB: loop body
LE: loop exit
PB: predicated region body
PF: predicated region fallthrough
CT: control target
= control target key end

     0   :  { %vm22_vm0 = vcmask 261120   ;;  %v148_v8 = vmov 0.0   ;;  %vm149_vm1 = vmmov 0   ;;  %s204_s0 = inlined_call_operand.vmem [shape: f32[8,32], index: 0, kind: input, shape index: {}]   ;;  %s205_s3 = inlined_call_operand.vmem [shape: bf16[32,128], index: 3, kind: input, shape index: {}]   ;;  %s206_s1 = inlined_call_operand.vmem [shape: f32[1,32], index: 1, kind: input, shape index: {}]   ;;  %s207_s2 = inlined_call_operand.vmem [shape: f32[1,32], index: 2, kind: input, shape index: {}]   ;;  %s208_s4 = inlined_call_operand.vmem [shape: f32[1,128], index: 4, kind: input, shape index: {}]   ;;  %s209_s5 = inlined_call_operand.vmem [shape: f32[8,128], index: 5, kind: output, shape index: {}]  }
   0x1   :  { %v21_v0 = vld [vmem:[%s204_s0] sm:$0xff]  ;;  %134 = vmatprep.subr.bf16.mxu0 %v148_v8  ;;  %v145_v9 = vld [vmem:[%s205_s3 + $0x8] sm:$0xff]   ;;  %138 = vmatprep.mubr.msk.bf16.mxu0 %vm149_vm1, %v148_v8 }
   0x2   :  { %v23_v1 = vsel %vm22_vm0, %v21_v0, 0.0  ;;  %v144_v7 = vld [vmem:[%s205_s3] sm:$0xff]  }
   0x3   :  { %24 = vadd.xlane.f32.xlu0 %v23_v1  ;;  %135 = vmatpush3.bf16.msra.mxu0 %v144_v7  ;;  %v125_v14 = vld [vmem:[%s206_s1] ss:$0 sm:$0xff] }
   0x4   :  { %136 = vmatprep.subr.bf16.mxu0 %v148_v8  ;;  %v126_v16 = vld [vmem:[%s207_s2] ss:$0 sm:$0xff] }
   0x5   :  { %v127_v20 = vld [vmem:[%s208_s4] ss:$0 sm:$0xff] }
   0x7   :  { %137 = vmatpush3.bf16.msra.mxu0 %v145_v9 }
  0x90   :  { %v25_v2 = vpop.xlane.xlu0 %24 }
  0x91   :  { %v27_v3 = vmul.f32 0.03125, %v25_v2 }
  0x93   :  { %v28_v4 = vsub.f32 %v21_v0, %v27_v3 }
  0x95   :  { %v29_v5 = vmul.f32 %v28_v4, %v28_v4 }
  0x97   :  { %v30_v6 = vsel %vm22_vm0, %v29_v5, 0.0 }
  0x98   :  { %31 = vadd.xlane.f32.xlu0 %v30_v6 }
 0x125   :  { %v32_v10 = vpop.xlane.xlu0 %31 }
 0x126   :  { %v33_v11 = vmul.f32 0.03125, %v32_v10 }
 0x128   :  { %v34_v12 = vadd.f32 1e-05, %v33_v11 }
 0x12a   :  { %146 = vrsqrt.f32 %v34_v12 }
 0x134   :  { %v147_v13 = vpop.eup %146 }
 0x135   :  { %v36_v15 = vmul.f32 %v147_v13, %v28_v4 }
 0x137   :  { %v44_v17 = vmul.f32 %v125_v14, %v36_v15 }
 0x139   :  { %v52_v18 = vadd.f32 %v126_v16, %v44_v17 }
 0x13b   :  { %v53_v19 = vpack.c.bf16 %v52_v18, %v52_v18 }
 0x13d   :  { %139 = vmatmul.mubr.msk.bf16.vlgmr.msra.gmra.mrb[0].mxu0 %vm22_vm0, %v53_v19 }
 0x210   :  { %v114_v21 = vpop.f32.mrb[0].mxu0 }
 0x211   :  { %v115_v22 = vadd.f32 %v127_v20, %v114_v21  ;;  %v140_v23 = vpop.f32.mrb[1].mxu0 }
 0x212   :  { %v117_v24 = vpop.f32.mrb[2].mxu0 }
 0x213   :  { %120 = vst [vmem:[%s209_s5] sm:$0xff] %v115_v22  ;;  %v141_v25 = vpop.f32.mrb[3].mxu0 }

</bundles_post_ra>
